<compile_context>
chip_gen: v7x
topology: tpu7x:2x2x1
jax: 0.10.0
libtpu: 0.0.40
codegen_flags: <defaults>
</compile_context>

<pallas_src>
import functools

import jax
import jax.numpy as jnp
from jax.experimental import pallas as pl
from jax.experimental.pallas import tpu as pltpu

LANE = 128          # lane width / feature padding
TILE_DEFAULT = 256  # node-row / neighbour-column tile for the tiled paths


def _round_up(x, m):
    return (x + m - 1) // m * m


def _pad2(x, rows, cols):
    r, c = x.shape
    return jnp.pad(x, ((0, rows - r), (0, cols - c)))


def _vmem_budget():
    """75% of physical VMEM: ~96 MiB on v5e/v6e, ~48 MiB on v7x."""
    cap = 64 * 1024 * 1024
    try:
        info = pltpu.get_tpu_info()
        cap = int(getattr(info, "vmem_capacity_bytes", cap))
    except Exception:
        pass
    return int(cap * 3 // 4)


# ---------------------------------------------------------------------------
# Kernels
# ---------------------------------------------------------------------------
def fused_kernel(x_ref, a_ref, w1_ref, b1_ref, wg_ref, bg_ref, wo_ref, bo_ref,
                 o_ref, *, num_layers, out_dim):
    """Whole forward in VMEM: encode -> num_layers GCN -> head -> log_softmax."""
    h = jnp.dot(x_ref[...].astype(jnp.bfloat16), w1_ref[...],
                preferred_element_type=jnp.float32) + b1_ref[...]
    h = jnp.maximum(h, 0.0)
    a = a_ref[...]                                   # bf16 (n_pad, n_pad)
    for l in range(num_layers):                      # static unroll
        hw = jnp.dot(h.astype(jnp.bfloat16), wg_ref[l],
                     preferred_element_type=jnp.float32)
        h = jnp.dot(a, hw.astype(jnp.bfloat16),
                    preferred_element_type=jnp.float32) + bg_ref[l]
        h = jnp.maximum(h, 0.0)
    logits = jnp.dot(h.astype(jnp.bfloat16), wo_ref[...],
                     preferred_element_type=jnp.float32) + bo_ref[...]
    col = jax.lax.broadcasted_iota(jnp.int32, logits.shape, 1)
    logits = jnp.where(col < out_dim, logits, -1e30)
    m = jnp.max(logits, axis=1, keepdims=True)
    z = logits - m
    lse = jnp.log(jnp.sum(jnp.exp(z), axis=1, keepdims=True))
    o_ref[...] = z - lse


def encode_kernel(x_ref, w1_ref, b1_ref, wg_ref, o_ref):
    """o = ReLU(x @ W1 + b1) @ Wg1, stored bf16 (first_lin + ReLU + L1 xform)."""
    x = x_ref[...].astype(jnp.bfloat16)
    h = jnp.dot(x, w1_ref[...], preferred_element_type=jnp.float32) + b1_ref[...]
    h = jnp.maximum(h, 0.0)
    o_ref[...] = jnp.dot(h.astype(jnp.bfloat16), wg_ref[...],
                         preferred_element_type=jnp.float32).astype(o_ref.dtype)


def gcn_res_mid_kernel(a_ref, m_ref, bg_ref, wg_next_ref, o_ref):
    """Resident-M middle layer: o = ReLU(A_row @ M + bg) @ Wg_next  (bf16 out)."""
    agg = jnp.dot(a_ref[...], m_ref[...], preferred_element_type=jnp.float32)
    h = jnp.maximum(agg + bg_ref[...], 0.0)
    o_ref[...] = jnp.dot(h.astype(jnp.bfloat16), wg_next_ref[...],
                         preferred_element_type=jnp.float32).astype(o_ref.dtype)


def gcn_res_final_kernel(a_ref, m_ref, bg_ref, wo_ref, bo_ref, o_ref, *,
                         out_dim):
    """Resident-M last layer: log_softmax(ReLU(A_row @ M + bg) @ Wo + bo)."""
    agg = jnp.dot(a_ref[...], m_ref[...], preferred_element_type=jnp.float32)
    h = jnp.maximum(agg + bg_ref[...], 0.0)
    logits = jnp.dot(h.astype(jnp.bfloat16), wo_ref[...],
                     preferred_element_type=jnp.float32) + bo_ref[...]
    col = jax.lax.broadcasted_iota(jnp.int32, logits.shape, 1)
    logits = jnp.where(col < out_dim, logits, -1e30)
    m = jnp.max(logits, axis=1, keepdims=True)
    z = logits - m
    lse = jnp.log(jnp.sum(jnp.exp(z), axis=1, keepdims=True))
    o_ref[...] = z - lse


def gcn_stream_mid_kernel(a_ref, m_ref, bg_ref, wg_next_ref, o_ref, acc_ref):
    """Streamed-M middle layer, reduced over neighbour axis k (grid axis 1)."""
    k = pl.program_id(1)

    @pl.when(k == 0)
    def _():
        acc_ref[...] = jnp.zeros_like(acc_ref)

    acc_ref[...] += jnp.dot(a_ref[...], m_ref[...],
                            preferred_element_type=jnp.float32)

    @pl.when(k == pl.num_programs(1) - 1)
    def _():
        h = jnp.maximum(acc_ref[...] + bg_ref[...], 0.0)
        o_ref[...] = jnp.dot(h.astype(jnp.bfloat16), wg_next_ref[...],
                             preferred_element_type=jnp.float32).astype(o_ref.dtype)


def gcn_stream_final_kernel(a_ref, m_ref, bg_ref, wo_ref, bo_ref, o_ref,
                            acc_ref, *, out_dim):
    """Streamed-M last layer + head + masked log_softmax."""
    k = pl.program_id(1)

    @pl.when(k == 0)
    def _():
        acc_ref[...] = jnp.zeros_like(acc_ref)

    acc_ref[...] += jnp.dot(a_ref[...], m_ref[...],
                            preferred_element_type=jnp.float32)

    @pl.when(k == pl.num_programs(1) - 1)
    def _():
        h = jnp.maximum(acc_ref[...] + bg_ref[...], 0.0)
        logits = jnp.dot(h.astype(jnp.bfloat16), wo_ref[...],
                         preferred_element_type=jnp.float32) + bo_ref[...]
        col = jax.lax.broadcasted_iota(jnp.int32, logits.shape, 1)
        logits = jnp.where(col < out_dim, logits, -1e30)
        m = jnp.max(logits, axis=1, keepdims=True)
        z = logits - m
        lse = jnp.log(jnp.sum(jnp.exp(z), axis=1, keepdims=True))
        o_ref[...] = z - lse


# ---------------------------------------------------------------------------
# Forward paths
# ---------------------------------------------------------------------------
def _forward_fused(x, a_hat, params, n, f_pad, h_pad, o_pad, out_dim,
                   num_layers, budget):
    n_pad = _round_up(max(n, 1), LANE)
    x_p = _pad2(x, n_pad, f_pad)
    a_p = _pad2(a_hat, n_pad, n_pad).astype(jnp.bfloat16)
    w1 = _pad2(params["w1"], f_pad, h_pad).astype(jnp.bfloat16)
    b1 = _pad2(params["b1"].reshape(1, -1), 1, h_pad)
    wg = jnp.stack([_pad2(w, h_pad, h_pad) for w in params["wg"]]
                   ).astype(jnp.bfloat16)                       # (L, h, h)
    bg = jnp.stack([_pad2(b.reshape(1, -1), 1, h_pad) for b in params["bg"]])
    wo = _pad2(params["wo"], h_pad, o_pad).astype(jnp.bfloat16)
    bo = _pad2(params["bo"].reshape(1, -1), 1, o_pad)

    vspec = pl.BlockSpec(memory_space=pltpu.MemorySpace.VMEM)
    flops = 2 * n_pad * (h_pad * (f_pad + o_pad)
                         + num_layers * h_pad * (n_pad + h_pad))
    bytes_acc = (2 * n_pad * n_pad + 4 * n_pad * (f_pad + o_pad)
                 + 2 * (f_pad * h_pad + num_layers * h_pad * h_pad
                        + h_pad * o_pad))
    out_p = pl.pallas_call(
        functools.partial(fused_kernel, num_layers=num_layers, out_dim=out_dim),
        out_shape=jax.ShapeDtypeStruct((n_pad, o_pad), jnp.float32),
        in_specs=[vspec] * 8,
        out_specs=vspec,
        compiler_params=pltpu.CompilerParams(vmem_limit_bytes=budget),
        cost_estimate=pl.CostEstimate(flops=flops,
                                      transcendentals=n_pad * o_pad,
                                      bytes_accessed=bytes_acc),
    )(x_p, a_p, w1, b1, wg, bg, wo, bo)
    return out_p[:n, :out_dim]


def _forward_tiled(x, a_hat, params, n, f_pad, h_pad, o_pad, out_dim,
                   num_layers, budget, resident):
    n128 = _round_up(max(n, 1), LANE)
    tile = n128 if n128 < TILE_DEFAULT else TILE_DEFAULT
    n_pad = _round_up(n, tile)
    n_i = n_pad // tile
    n_k = n_pad // tile

    x_p = _pad2(x, n_pad, f_pad)
    a_p = _pad2(a_hat, n_pad, n_pad).astype(jnp.bfloat16)
    w1 = _pad2(params["w1"], f_pad, h_pad).astype(jnp.bfloat16)
    b1 = _pad2(params["b1"].reshape(1, -1), 1, h_pad)
    wgs = [_pad2(w, h_pad, h_pad).astype(jnp.bfloat16) for w in params["wg"]]
    bgs = [_pad2(b.reshape(1, -1), 1, h_pad) for b in params["bg"]]
    wo = _pad2(params["wo"], h_pad, o_pad).astype(jnp.bfloat16)
    bo = _pad2(params["bo"].reshape(1, -1), 1, o_pad)

    cp_row = pltpu.CompilerParams(dimension_semantics=("parallel",),
                                  vmem_limit_bytes=budget)
    cp_red = pltpu.CompilerParams(dimension_semantics=("parallel", "arbitrary"),
                                  vmem_limit_bytes=budget)

    # ---- encode pass: M1 = ReLU(x @ W1 + b1) @ Wg1 (bf16 out) --------------
    m_cur = pl.pallas_call(
        encode_kernel,
        out_shape=jax.ShapeDtypeStruct((n_pad, h_pad), jnp.bfloat16),
        grid_spec=pltpu.PrefetchScalarGridSpec(
            num_scalar_prefetch=0,
            grid=(n_i,),
            in_specs=[
                pl.BlockSpec((tile, f_pad), lambda i: (i, 0)),
                pl.BlockSpec((f_pad, h_pad), lambda i: (0, 0)),   # resident W1
                pl.BlockSpec((1, h_pad), lambda i: (0, 0)),       # resident b1
                pl.BlockSpec((h_pad, h_pad), lambda i: (0, 0)),   # resident Wg1
            ],
            out_specs=pl.BlockSpec((tile, h_pad), lambda i: (i, 0))),
        compiler_params=cp_row,
        cost_estimate=pl.CostEstimate(
            flops=2 * n_pad * h_pad * (f_pad + h_pad),
            transcendentals=0,
            bytes_accessed=4 * n_pad * f_pad + 2 * n_pad * h_pad
            + 2 * h_pad * (f_pad + h_pad)),
    )(x_p, w1, b1, wgs[0])

    # ---- GCN layers ---------------------------------------------------------
    out_p = None
    for l in range(num_layers):
        is_last = (l == num_layers - 1)
        o_cols = o_pad if is_last else h_pad

        if resident:
            a_spec = pl.BlockSpec((tile, n_pad), lambda i: (i, 0))
            m_spec = pl.BlockSpec((n_pad, h_pad), lambda i: (0, 0))  # resident M
            bg_spec = pl.BlockSpec((1, h_pad), lambda i: (0, 0))
            w_spec = pl.BlockSpec((h_pad, o_cols), lambda i: (0, 0))
            bo_spec = pl.BlockSpec((1, o_pad), lambda i: (0, 0))
            out_spec = pl.BlockSpec((tile, o_cols), lambda i: (i, 0))
            grid = (n_i,)
            cparams = cp_row
            scratch = []
        else:
            a_spec = pl.BlockSpec((tile, tile), lambda i, k: (i, k))
            m_spec = pl.BlockSpec((tile, h_pad), lambda i, k: (k, 0))
            bg_spec = pl.BlockSpec((1, h_pad), lambda i, k: (0, 0))
            w_spec = pl.BlockSpec((h_pad, o_cols), lambda i, k: (0, 0))
            bo_spec = pl.BlockSpec((1, o_pad), lambda i, k: (0, 0))
            out_spec = pl.BlockSpec((tile, o_cols), lambda i, k: (i, 0))
            grid = (n_i, n_k)
            cparams = cp_red
            scratch = [pltpu.VMEM((tile, h_pad), jnp.float32)]

        m_restream = 1 if resident else n_i
        agg_flops = 2 * n_pad * n_pad * h_pad + 2 * n_pad * h_pad * o_cols
        agg_bytes = (2 * n_pad * n_pad + m_restream * 2 * n_pad * h_pad
                     + (4 if is_last else 2) * n_pad * o_cols
                     + 2 * h_pad * o_cols)

        if not is_last:
            kern = gcn_res_mid_kernel if resident else gcn_stream_mid_kernel
            m_cur = pl.pallas_call(
                kern,
                out_shape=jax.ShapeDtypeStruct((n_pad, h_pad), jnp.bfloat16),
                grid_spec=pltpu.PrefetchScalarGridSpec(
                    num_scalar_prefetch=0, grid=grid,
                    in_specs=[a_spec, m_spec, bg_spec, w_spec],
                    out_specs=out_spec,
                    scratch_shapes=scratch),
                compiler_params=cparams,
                cost_estimate=pl.CostEstimate(flops=agg_flops, transcendentals=0,
                                              bytes_accessed=agg_bytes),
            )(a_p, m_cur, bgs[l], wgs[l + 1])
        else:
            kern = gcn_res_final_kernel if resident else gcn_stream_final_kernel
            out_p = pl.pallas_call(
                functools.partial(kern, out_dim=out_dim),
                out_shape=jax.ShapeDtypeStruct((n_pad, o_pad), jnp.float32),
                grid_spec=pltpu.PrefetchScalarGridSpec(
                    num_scalar_prefetch=0, grid=grid,
                    in_specs=[a_spec, m_spec, bg_spec, w_spec, bo_spec],
                    out_specs=out_spec,
                    scratch_shapes=scratch),
                compiler_params=cparams,
                cost_estimate=pl.CostEstimate(flops=agg_flops,
                                              transcendentals=n_pad * o_pad,
                                              bytes_accessed=agg_bytes),
            )(a_p, m_cur, bgs[l], wo, bo)

    return out_p[:n, :out_dim]


def mlp_gcn_forward(x, a_hat, params, mode="auto"):
    """mode in {"auto", "fused", "resident", "streamed"}."""
    n, f_in = x.shape
    hidden = params["w1"].shape[1]
    out_dim = params["wo"].shape[1]
    num_layers = len(params["wg"])
    assert num_layers >= 1, "wrapper implements num_layers >= 1 (module default 2)"

    budget = _vmem_budget()
    f_pad = _round_up(f_in, LANE)
    h_pad = _round_up(hidden, LANE)
    o_pad = _round_up(out_dim, LANE)

    if mode == "auto":
        n128 = _round_up(max(n, 1), LANE)
        fused_bytes = (2 * n128 * n128                              # A bf16
                       + 4 * n128 * f_pad                           # X f32
                       + 2 * (f_pad * h_pad + num_layers * h_pad * h_pad
                              + h_pad * o_pad)                      # weights
                       + 4 * n128 * o_pad                           # out f32
                       + 6 * n128 * h_pad * 4)                      # live temps
        if fused_bytes <= 0.4 * budget:
            mode = "fused"
        else:
            tile = TILE_DEFAULT
            n_pad = _round_up(n, tile)
            resident_bytes = (2 * 2 * tile * n_pad                  # A row blocks
                              + 2 * 2 * n_pad * h_pad               # resident M
                              + 2 * 2 * tile * h_pad                # out blocks
                              + 4 * h_pad * h_pad)                  # weights
            mode = "resident" if resident_bytes <= 0.7 * budget else "streamed"

    if mode == "fused":
        return _forward_fused(x, a_hat, params, n, f_pad, h_pad, o_pad,
                              out_dim, num_layers, budget)
    if mode in ("resident", "streamed"):
        return _forward_tiled(x, a_hat, params, n, f_pad, h_pad, o_pad,
                              out_dim, num_layers, budget,
                              resident=(mode == "resident"))
    raise ValueError(f"unknown mode: {mode}")


# ---------------------------------------------------------------------------
# Glue: dense normalized adjacency, params, pure-JAX reference
# ---------------------------------------------------------------------------
def build_a_hat(edge_index, num_nodes):
    """Dense D^{-1/2}(A+I)D^{-1/2} from edge_index [2, E] (src -> dst)."""
    src, dst = edge_index[0], edge_index[1]
    a = jnp.zeros((num_nodes, num_nodes), jnp.float32).at[dst, src].set(1.0)
    a = a + jnp.eye(num_nodes, dtype=jnp.float32)
    deg = jnp.sum(a, axis=1)
    dinv = jnp.where(deg > 0, 1.0 / jnp.sqrt(deg), 0.0)
    return dinv[:, None] * a * dinv[None, :]


def init_params(key, input_dim, hidden_dim, output_dim, num_layers=2):
    """Deterministic synthetic weights, stored transposed as (in_dim, out_dim)."""
    ks = jax.random.split(key, 2 * num_layers + 4)
    s = 0.1
    return {
        "w1": s * jax.random.normal(ks[0], (input_dim, hidden_dim), jnp.float32),
        "b1": s * jax.random.normal(ks[1], (hidden_dim,), jnp.float32),
        "wg": [s * jax.random.normal(ks[2 + 2 * l], (hidden_dim, hidden_dim),
                                     jnp.float32) for l in range(num_layers)],
        "bg": [s * jax.random.normal(ks[3 + 2 * l], (hidden_dim,), jnp.float32)
               for l in range(num_layers)],
        "wo": s * jax.random.normal(ks[-2], (hidden_dim, output_dim), jnp.float32),
        "bo": s * jax.random.normal(ks[-1], (output_dim,), jnp.float32),
    }


def mlp_gcn_reference(x, a_hat, params):
    h = jnp.maximum(x @ params["w1"] + params["b1"], 0.0)
    for wg, bg in zip(params["wg"], params["bg"]):
        h = jnp.maximum(a_hat @ (h @ wg) + bg, 0.0)
    logits = h @ params["wo"] + params["bo"]
    return jax.nn.log_softmax(logits, axis=1)


if __name__ == "__main__":
    key = jax.random.PRNGKey(0)
    k_x, k_p = jax.random.split(key)

    num_nodes = 8
    input_dim = 16
    hidden_dim = 32
    output_dim = 7
    num_layers = 2

    x = jax.random.normal(k_x, (num_nodes, input_dim), jnp.float32)
    # Small fixed edge list (ring + a few chords), made symmetric.
    src = jnp.array([0, 1, 2, 3, 4, 5, 6, 7, 0, 2, 4], dtype=jnp.int32)
    dst = jnp.array([1, 2, 3, 4, 5, 6, 7, 0, 4, 6, 1], dtype=jnp.int32)
    edge_index = jnp.stack([jnp.concatenate([src, dst]),
                            jnp.concatenate([dst, src])], axis=0)

    a_hat = build_a_hat(edge_index, num_nodes)
    params = init_params(k_p, input_dim, hidden_dim, output_dim, num_layers)
    ref = mlp_gcn_reference(x, a_hat, params)

    # Exercise all three paths (auto picks "fused" at this size).
    for mode in ("fused", "resident", "streamed"):
        out = mlp_gcn_forward(x, a_hat, params, mode=mode)
        jax.block_until_ready(out)
        assert out.shape == (num_nodes, output_dim), (mode, out.shape)

        # sanity 1: log_softmax rows exp-sum to 1
        row_sums = jnp.exp(out).sum(axis=1)
        assert jnp.allclose(row_sums, 1.0, atol=1e-3), (mode, row_sums)

        # sanity 2: matches pure-JAX f32 reference (bf16 MXU feed => loose atol)
        err = jnp.max(jnp.abs(out - ref))
        assert jnp.allclose(out, ref, atol=5e-2), (mode, err)

    out_auto = mlp_gcn_forward(x, a_hat, params, mode="auto")
    jax.block_until_ready(out_auto)
    assert jnp.allclose(out_auto, ref, atol=5e-2)

    print("KERNEL_OK")
</pallas_src>

<mosaic_0001>
module attributes {stable_mosaic.version = 11 : i64} {
  func.func @fused_kernel(%arg0: memref<128x128xf32, #tpu.memory_space<vmem>>, %arg1: memref<128x128xbf16, #tpu.memory_space<vmem>>, %arg2: memref<128x128xbf16, #tpu.memory_space<vmem>>, %arg3: memref<1x128xf32, #tpu.memory_space<vmem>>, %arg4: memref<2x128x128xbf16, #tpu.memory_space<vmem>>, %arg5: memref<2x1x128xf32, #tpu.memory_space<vmem>>, %arg6: memref<128x128xbf16, #tpu.memory_space<vmem>>, %arg7: memref<1x128xf32, #tpu.memory_space<vmem>>, %arg8: memref<128x128xf32, #tpu.memory_space<vmem>>) attributes {dimension_semantics = [], scalar_prefetch = 0 : i64, scratch_operands = 0 : i64, tpu.core_type = #tpu.core_type<tc>} {
    %c0 = arith.constant 0 : index
    %c0_0 = arith.constant 0 : index
    %0 = vector.load %arg0[%c0, %c0_0] : memref<128x128xf32, #tpu.memory_space<vmem>>, vector<128x128xf32>
    %1 = arith.truncf %0 : vector<128x128xf32> to vector<128x128xbf16>
    %c0_1 = arith.constant 0 : index
    %c0_2 = arith.constant 0 : index
    %2 = vector.load %arg2[%c0_1, %c0_2] : memref<128x128xbf16, #tpu.memory_space<vmem>>, vector<128x128xbf16>
    %cst = arith.constant dense<0.000000e+00> : vector<128x128xf32>
    %3 = tpu.matmul %1, %2, %cst {dimension_numbers = #tpu.dot_dimension_numbers<[1], [0], [0], [1], [0, 0, 1, 1], [], []>} : vector<128x128xbf16>, vector<128x128xbf16>, vector<128x128xf32> -> vector<128x128xf32>
    %c0_3 = arith.constant 0 : index
    %c0_4 = arith.constant 0 : index
    %4 = vector.load %arg3[%c0_3, %c0_4] : memref<1x128xf32, #tpu.memory_space<vmem>>, vector<1x128xf32>
    %5 = vector.broadcast %4 : vector<1x128xf32> to vector<128x128xf32>
    %6 = arith.addf %3, %5 : vector<128x128xf32>
    %cst_5 = arith.constant 0.000000e+00 : f32
    %7 = vector.broadcast %cst_5 : f32 to vector<128x128xf32>
    %8 = arith.maximumf %6, %7 : vector<128x128xf32>
    %c0_6 = arith.constant 0 : index
    %c0_7 = arith.constant 0 : index
    %9 = vector.load %arg1[%c0_6, %c0_7] : memref<128x128xbf16, #tpu.memory_space<vmem>>, vector<128x128xbf16>
    %10 = arith.truncf %8 : vector<128x128xf32> to vector<128x128xbf16>
    %c0_8 = arith.constant 0 : index
    %c0_9 = arith.constant 0 : index
    %c0_10 = arith.constant 0 : index
    %11 = vector.load %arg4[%c0_8, %c0_9, %c0_10] : memref<2x128x128xbf16, #tpu.memory_space<vmem>>, vector<1x128x128xbf16>
    %12 = vector.shape_cast %11 : vector<1x128x128xbf16> to vector<128x128xbf16>
    %cst_11 = arith.constant dense<0.000000e+00> : vector<128x128xf32>
    %13 = tpu.matmul %10, %12, %cst_11 {dimension_numbers = #tpu.dot_dimension_numbers<[1], [0], [0], [1], [0, 0, 1, 1], [], []>} : vector<128x128xbf16>, vector<128x128xbf16>, vector<128x128xf32> -> vector<128x128xf32>
    %14 = arith.truncf %13 : vector<128x128xf32> to vector<128x128xbf16>
    %cst_12 = arith.constant dense<0.000000e+00> : vector<128x128xf32>
    %15 = tpu.matmul %9, %14, %cst_12 {dimension_numbers = #tpu.dot_dimension_numbers<[1], [0], [0], [1], [0, 0, 1, 1], [], []>} : vector<128x128xbf16>, vector<128x128xbf16>, vector<128x128xf32> -> vector<128x128xf32>
    %c0_13 = arith.constant 0 : index
    %c0_14 = arith.constant 0 : index
    %c0_15 = arith.constant 0 : index
    %16 = vector.load %arg5[%c0_13, %c0_14, %c0_15] : memref<2x1x128xf32, #tpu.memory_space<vmem>>, vector<1x1x128xf32>
    %17 = vector.shape_cast %16 : vector<1x1x128xf32> to vector<1x128xf32>
    %18 = vector.broadcast %17 : vector<1x128xf32> to vector<128x128xf32>
    %19 = arith.addf %15, %18 : vector<128x128xf32>
    %cst_16 = arith.constant 0.000000e+00 : f32
    %20 = vector.broadcast %cst_16 : f32 to vector<128x128xf32>
    %21 = arith.maximumf %19, %20 : vector<128x128xf32>
    %22 = arith.truncf %21 : vector<128x128xf32> to vector<128x128xbf16>
    %c1 = arith.constant 1 : index
    %c0_17 = arith.constant 0 : index
    %c0_18 = arith.constant 0 : index
    %23 = vector.load %arg4[%c1, %c0_17, %c0_18] : memref<2x128x128xbf16, #tpu.memory_space<vmem>>, vector<1x128x128xbf16>
    %24 = vector.shape_cast %23 : vector<1x128x128xbf16> to vector<128x128xbf16>
    %cst_19 = arith.constant dense<0.000000e+00> : vector<128x128xf32>
    %25 = tpu.matmul %22, %24, %cst_19 {dimension_numbers = #tpu.dot_dimension_numbers<[1], [0], [0], [1], [0, 0, 1, 1], [], []>} : vector<128x128xbf16>, vector<128x128xbf16>, vector<128x128xf32> -> vector<128x128xf32>
    %26 = arith.truncf %25 : vector<128x128xf32> to vector<128x128xbf16>
    %cst_20 = arith.constant dense<0.000000e+00> : vector<128x128xf32>
    %27 = tpu.matmul %9, %26, %cst_20 {dimension_numbers = #tpu.dot_dimension_numbers<[1], [0], [0], [1], [0, 0, 1, 1], [], []>} : vector<128x128xbf16>, vector<128x128xbf16>, vector<128x128xf32> -> vector<128x128xf32>
    %c1_21 = arith.constant 1 : index
    %c0_22 = arith.constant 0 : index
    %c0_23 = arith.constant 0 : index
    %28 = vector.load %arg5[%c1_21, %c0_22, %c0_23] : memref<2x1x128xf32, #tpu.memory_space<vmem>>, vector<1x1x128xf32>
    %29 = vector.shape_cast %28 : vector<1x1x128xf32> to vector<1x128xf32>
    %30 = vector.broadcast %29 : vector<1x128xf32> to vector<128x128xf32>
    %31 = arith.addf %27, %30 : vector<128x128xf32>
    %cst_24 = arith.constant 0.000000e+00 : f32
    %32 = vector.broadcast %cst_24 : f32 to vector<128x128xf32>
    %33 = arith.maximumf %31, %32 : vector<128x128xf32>
    %34 = arith.truncf %33 : vector<128x128xf32> to vector<128x128xbf16>
    %c0_25 = arith.constant 0 : index
    %c0_26 = arith.constant 0 : index
    %35 = vector.load %arg6[%c0_25, %c0_26] : memref<128x128xbf16, #tpu.memory_space<vmem>>, vector<128x128xbf16>
    %cst_27 = arith.constant dense<0.000000e+00> : vector<128x128xf32>
    %36 = tpu.matmul %34, %35, %cst_27 {dimension_numbers = #tpu.dot_dimension_numbers<[1], [0], [0], [1], [0, 0, 1, 1], [], []>} : vector<128x128xbf16>, vector<128x128xbf16>, vector<128x128xf32> -> vector<128x128xf32>
    %c0_28 = arith.constant 0 : index
    %c0_29 = arith.constant 0 : index
    %37 = vector.load %arg7[%c0_28, %c0_29] : memref<1x128xf32, #tpu.memory_space<vmem>>, vector<1x128xf32>
    %38 = vector.broadcast %37 : vector<1x128xf32> to vector<128x128xf32>
    %39 = arith.addf %36, %38 : vector<128x128xf32>
    %40 = tpu.iota {dimensions = array<i32: 1>} : vector<128x128xi32>
    %c7_i32 = arith.constant 7 : i32
    %41 = vector.broadcast %c7_i32 : i32 to vector<128x128xi32>
    %42 = arith.cmpi slt, %40, %41 : vector<128x128xi32>
    %cst_30 = arith.constant -1.000000e+30 : f32
    %43 = vector.broadcast %cst_30 : f32 to vector<128x128xf32>
    %44 = arith.select %42, %39, %43 : vector<128x128xi1>, vector<128x128xf32>
    %cst_31 = arith.constant dense<0xFF800000> : vector<128xf32>
    %45 = vector.multi_reduction <maximumf>, %44, %cst_31 [1] : vector<128x128xf32> to vector<128xf32>
    %46 = vector.shape_cast %45 : vector<128xf32> to vector<128x1xf32>
    %47 = vector.broadcast %46 : vector<128x1xf32> to vector<128x128xf32>
    %48 = arith.subf %44, %47 : vector<128x128xf32>
    %49 = math.exp %48 : vector<128x128xf32>
    %cst_32 = arith.constant dense<0.000000e+00> : vector<128xf32>
    %50 = vector.multi_reduction <add>, %49, %cst_32 [1] : vector<128x128xf32> to vector<128xf32>
    %51 = vector.shape_cast %50 : vector<128xf32> to vector<128x1xf32>
    %52 = math.log %51 : vector<128x1xf32>
    %53 = vector.broadcast %52 : vector<128x1xf32> to vector<128x128xf32>
    %54 = arith.subf %48, %53 : vector<128x128xf32>
    %c0_33 = arith.constant 0 : index
    %c0_34 = arith.constant 0 : index
    %55 = vector.load %arg8[%c0_33, %c0_34] : memref<128x128xf32, #tpu.memory_space<vmem>>, vector<128x128xf32>
    tpu.vector_store %arg8[%c0_33, %c0_34], %54 {strides = array<i32>} : memref<128x128xf32, #tpu.memory_space<vmem>>, vector<128x128xf32>,
    return
  }
}

</mosaic_0001>

<bundles_post_ra>
// kernel: tpu_custom_call.1
= control target key start
LH: loop header
LB: loop body
LE: loop exit
PB: predicated region body
PF: predicated region fallthrough
CT: control target
= control target key end

     0   :  { %13 = vsyncpa [#allocation3], 0  ;;  %s2256_s0 = inlined_call_operand.hbm [shape: f32[128,128], index: 0, kind: input, shape index: {}]   ;;  %s2257_s1 = inlined_call_operand.hbm [shape: bf16[128,128], index: 1, kind: input, shape index: {}]   ;;  %s2258_s2 = inlined_call_operand.hbm [shape: bf16[128,128], index: 2, kind: input, shape index: {}]   ;;  %s2259_s3 = inlined_call_operand.vmem [shape: f32[1,128], index: 3, kind: input, shape index: {}]   ;;  %s2260_s4 = inlined_call_operand.hbm [shape: bf16[2,128,128], index: 4, kind: input, shape index: {}]   ;;  %s2261_s5 = inlined_call_operand.vmem [shape: f32[2,1,128], index: 5, kind: input, shape index: {}]   ;;  %s2262_s6 = inlined_call_operand.hbm [shape: bf16[128,128], index: 6, kind: input, shape index: {}]   ;;  %s2263_s7 = inlined_call_operand.vmem [shape: f32[1,128], index: 7, kind: input, shape index: {}]   ;;  %s2264_s8 = inlined_call_operand.hbm [shape: f32[128,128], index: 8, kind: output, shape index: {}]  }
   0x1   :  { %14 = vsyncpa [#allocation6], 0 }
   0x2   :  { %15 = vsyncpa [#allocation9], 0 }
   0x3   :  { %16 = vsyncpa [#allocation4], 0  ;;  %s1944_s27 = smov [#allocation5]   ;;  %s1804_s9 = scalar_lea.hbm %s2257_s1, 1024 }
   0x4   :  { %s34_s28 = sshll.u32 %s1944_s27, 4  ;;  %p1805_p0 = scmp.ne.s32.totalorder %s2257_s1, %s1804_s9  ;;  %s35_s28 = int_to_ptr.vmem [resolvable:$true] %s34_s28 }
   0x5   :  { %p1808_p1 = scmp.lt.u32.totalorder %s1804_s9, %s2257_s1 }
   0x7   :  { %p1810_p2 = pnand %p1808_p1, %p1805_p0 }
   0x9   :  { %1813 = shalt.err (!%p1810_p2)
}
   0xa   :  { %s1814_s14 = scalar_lea.vmem %s35_s28, 1024  ;;  %p1819_p4 = scmp.lt.s32.totalorder %s35_s28, %s35_s28 }
   0xb   :  { %p1815_p3 = scmp.ne.s32.totalorder %s35_s28, %s1814_s14  ;;  %p1820_p5 = scmp.lt.s32.totalorder %s1814_s14, %s1814_s14 }
   0xd   :  { %p1821_p6 = por %p1820_p5, %p1819_p4 }
   0xf   :  { %p1822_p7 = pnand %p1821_p6, %p1815_p3 }
  0x11   :  { %1825 = shalt.err (!%p1822_p7)
}
  0x12   :  { %s1945_s15 = smov 64   ;;  %s1946_s16 = smov 4  }
  0x13   :  { %40 = dma.hbm_to_vmem [thread:$0]  %s2257_s1, 1024, %s35_s28, [#allocation6], %s1945_s15, %s1945_s15, %s1946_s16  }
  0x14   :  { %s1947_s19 = smov [#allocation8]   ;;  %s1948_s21 = smov [#allocation2]  }
  0x15   :  { %s60_s20 = sshll.u32 %s1947_s19, 4  ;;  %s22_s22 = sshll.u32 %s1948_s21, 4  ;;  %s61_s20 = int_to_ptr.vmem [resolvable:$true] %s60_s20  ;;  %s23_s22 = int_to_ptr.vmem [resolvable:$true] %s22_s22 }
  0x16   :  { %s1826_s25 = scalar_lea.hbm %s2260_s4, 2048 }
  0x17   :  { %p1827_p8 = scmp.ne.s32.totalorder %s2260_s4, %s1826_s25  ;;  %p1830_p9 = scmp.lt.u32.totalorder %s1826_s25, %s2260_s4 }
  0x19   :  { %p1832_p10 = pnand %p1830_p9, %p1827_p8 }
  0x1b   :  { %1835 = shalt.err (!%p1832_p10)
}
  0x1c   :  { %s1836_s1 = scalar_lea.vmem %s61_s20, 2048  ;;  %p1841_p12 = scmp.lt.s32.totalorder %s61_s20, %s61_s20 }
  0x1d   :  { %p1837_p11 = scmp.ne.s32.totalorder %s61_s20, %s1836_s1  ;;  %p1842_p13 = scmp.lt.s32.totalorder %s1836_s1, %s1836_s1 }
  0x1f   :  { %p1843_p0 = por %p1842_p13, %p1841_p12 }
  0x21   :  { %p1844_p1 = pnand %p1843_p0, %p1837_p11 }
  0x23   :  { %1847 = shalt.err (!%p1844_p1)
}
  0x24   :  { %66 = dma.hbm_to_vmem [thread:$0]  %s2260_s4, 2048, %s61_s20, [#allocation9], %s1945_s15, %s1945_s15, %s1946_s16  }
  0x25   :  { %s1848_s12 = scalar_lea.hbm %s2256_s0, 2048 }
  0x26   :  { %p1849_p2 = scmp.ne.s32.totalorder %s2256_s0, %s1848_s12  ;;  %p1852_p3 = scmp.lt.u32.totalorder %s1848_s12, %s2256_s0 }
  0x28   :  { %p1854_p4 = pnand %p1852_p3, %p1849_p2 }
  0x2a   :  { %1857 = shalt.err (!%p1854_p4)
}
  0x2b   :  { %s1858_s19 = scalar_lea.vmem %s23_s22, 2048  ;;  %p1863_p6 = scmp.lt.s32.totalorder %s23_s22, %s23_s22 }
  0x2c   :  { %p1859_p5 = scmp.ne.s32.totalorder %s23_s22, %s1858_s19  ;;  %p1864_p7 = scmp.lt.s32.totalorder %s1858_s19, %s1858_s19 }
  0x2e   :  { %p1865_p8 = por %p1864_p7, %p1863_p6 }
  0x30   :  { %p1866_p9 = pnand %p1865_p8, %p1859_p5 }
  0x32   :  { %1869 = shalt.err (!%p1866_p9)
}
  0x33   :  { %s1949_s4 = smov 128   ;;  %s1950_s20 = smov 8  }
  0x34   :  { %28 = dma.hbm_to_vmem [thread:$0]  %s2256_s0, 2048, %s23_s22, [#allocation3], %s1949_s4, %s1949_s4, %s1950_s20  }
  0x35   :  { %s1951_s24 = smov [#allocation7]   ;;  %s1952_s26 = smov [#allocation10]  }
  0x36   :  { %s46_s25 = sshll.u32 %s1951_s24, 4  ;;  %s74_s27 = sshll.u32 %s1952_s26, 4  ;;  %s47_s25 = int_to_ptr.vmem [resolvable:$true] %s46_s25  ;;  %s75_s27 = int_to_ptr.vmem [resolvable:$true] %s74_s27 }
  0x37   :  { %s1870_s1 = scalar_lea.hbm %s2258_s2, 1024 }
  0x38   :  { %p1871_p10 = scmp.ne.s32.totalorder %s2258_s2, %s1870_s1  ;;  %p1874_p11 = scmp.lt.u32.totalorder %s1870_s1, %s2258_s2 }
  0x3a   :  { %p1876_p12 = pnand %p1874_p11, %p1871_p10 }
  0x3c   :  { %1879 = shalt.err (!%p1876_p12)
}
  0x3d   :  { %s1880_s0 = scalar_lea.vmem %s47_s25, 1024  ;;  %p1885_p0 = scmp.lt.s32.totalorder %s47_s25, %s47_s25 }
  0x3e   :  { %p1881_p13 = scmp.ne.s32.totalorder %s47_s25, %s1880_s0  ;;  %p1886_p1 = scmp.lt.s32.totalorder %s1880_s0, %s1880_s0 }
  0x40   :  { %p1887_p2 = por %p1886_p1, %p1885_p0 }
  0x42   :  { %p1888_p3 = pnand %p1887_p2, %p1881_p13 }
  0x44   :  { %1891 = shalt.err (!%p1888_p3)
}
  0x45   :  { %52 = dma.hbm_to_vmem [thread:$0]  %s2258_s2, 1024, %s47_s25, [#allocation6], %s1945_s15, %s1945_s15, %s1946_s16  }
  0x46   :  { %s1892_s17 = scalar_lea.hbm %s2262_s6, 1024 }
  0x47   :  { %p1893_p4 = scmp.ne.s32.totalorder %s2262_s6, %s1892_s17  ;;  %p1896_p5 = scmp.lt.u32.totalorder %s1892_s17, %s2262_s6 }
  0x49   :  { %p1898_p6 = pnand %p1896_p5, %p1893_p4 }
  0x4b   :  { %1901 = shalt.err (!%p1898_p6)
}
  0x4c   :  { %s1902_s24 = scalar_lea.vmem %s75_s27, 1024  ;;  %p1907_p8 = scmp.lt.s32.totalorder %s75_s27, %s75_s27 }
  0x4d   :  { %p1903_p7 = scmp.ne.s32.totalorder %s75_s27, %s1902_s24  ;;  %p1908_p9 = scmp.lt.s32.totalorder %s1902_s24, %s1902_s24 }
  0x4f   :  { %p1909_p10 = por %p1908_p9, %p1907_p8 }
  0x51   :  { %p1910_p11 = pnand %p1909_p10, %p1903_p7 }
  0x53   :  { %1913 = shalt.err (!%p1910_p11)
}
  0x54   :  { %80 = dma.hbm_to_vmem [thread:$0]  %s2262_s6, 1024, %s75_s27, [#allocation9], %s1945_s15, %s1945_s15, %s1946_s16  }
  0x55   :  { %1936 = dma.done.wait [#allocation3], 2048  }
  0x56   :  { %1937 = vsyncadd [#allocation3], 4294965248 }
  0x57   :  { %1938 = dma.done.wait [#allocation6], 2048  }
  0x58   :  { %1939 = vsyncadd [#allocation6], 4294965248 }
  0x59   :  { %1940 = dma.done.wait [#allocation9], 3072  }
  0x5a   :  { %1941 = vsyncadd [#allocation9], 4294964224  ;;  %v1700_v0 = vld [vmem:[#allocation7] sm:$0xff]   ;;  %v1701_v1 = vld [vmem:[#allocation7 + $0x8] sm:$0xff]  }
  0x5b   :  { %1498 = vmatprep.subr.bf16.mxu0 %v1700_v0  ;;  %v1702_v2 = vld [vmem:[#allocation7 + $0x10] sm:$0xff]   ;;  %v1703_v3 = vld [vmem:[#allocation7 + $0x18] sm:$0xff]   ;;  %v99_v4 = vld [vmem:[#allocation2] sm:$0xff] }
  0x5c   :  { %1499 = vmatpush3.bf16.msra.mxu0 %v1700_v0  ;;  %v100_v5 = vld [vmem:[#allocation2 + $0x8] sm:$0xff]  ;;  %v1704_v7 = vld [vmem:[#allocation7 + $0x20] sm:$0xff]   ;;  %v1710_v11 = vld [vmem:[#allocation8 + $0x10] sm:$0xff]  }
  0x5d   :  { %1500 = vmatprep.subr.bf16.mxu0 %v1701_v1  ;;  %v115_v6 = vpack.c.bf16 %v100_v5, %v99_v4  ;;  %v1708_v8 = vld [vmem:[#allocation8] sm:$0xff]   ;;  %v1709_v9 = vld [vmem:[#allocation8 + $0x8] sm:$0xff]   ;;  %v1706_v12 = vld [vmem:[#allocation7 + $0x30] sm:$0xff]  }
  0x5e   :  { %v1705_v10 = vld [vmem:[#allocation7 + $0x28] sm:$0xff]   ;;  %1530 = vmatprep.subr.bf16.mxu1 %v1708_v8  ;;  %v1711_v13 = vld [vmem:[#allocation8 + $0x18] sm:$0xff]   ;;  %v1712_v15 = vld [vmem:[#allocation8 + $0x20] sm:$0xff]  }
  0x5f   :  { %1514 = vmatprep.mubr.bf16.mxu0 %v115_v6  ;;  %1531 = vmatpush3.bf16.msra.mxu1 %v1708_v8  ;;  %v1707_v14 = vld [vmem:[#allocation7 + $0x38] sm:$0xff]   ;;  %v101_v16 = vld [vmem:[#allocation2 + $0x10] sm:$0xff]  ;;  %v103_v18 = vld [vmem:[#allocation2 + $0x20] sm:$0xff] }
  0x60   :  { %1501 = vmatpush3.bf16.msra.mxu0 %v1701_v1  ;;  %1532 = vmatprep.subr.bf16.mxu1 %v1709_v9  ;;  %v102_v17 = vld [vmem:[#allocation2 + $0x18] sm:$0xff]  ;;  %v104_v19 = vld [vmem:[#allocation2 + $0x28] sm:$0xff]  ;;  %v105_v23 = vld [vmem:[#allocation2 + $0x30] sm:$0xff] }
  0x61   :  { %1502 = vmatprep.subr.bf16.mxu0 %v1702_v2  ;;  %v1713_v20 = vld [vmem:[#allocation8 + $0x28] sm:$0xff]   ;;  %v116_v21 = vpack.c.bf16 %v102_v17, %v101_v16  ;;  %v117_v22 = vpack.c.bf16 %v104_v19, %v103_v18  ;;  %v106_v24 = vld [vmem:[#allocation2 + $0x38] sm:$0xff]  ;;  %v107_v25 = vld [vmem:[#allocation2 + $0x40] sm:$0xff] }
  0x62   :  { %v108_v26 = vld [vmem:[#allocation2 + $0x48] sm:$0xff]  ;;  %v118_v27 = vpack.c.bf16 %v106_v24, %v105_v23  ;;  %v109_v29 = vld [vmem:[#allocation2 + $0x50] sm:$0xff]  ;;  %v110_v30 = vld [vmem:[#allocation2 + $0x58] sm:$0xff] }
  0x63   :  { %1533 = vmatpush3.bf16.msra.mxu1 %v1709_v9  ;;  %v119_v28 = vpack.c.bf16 %v108_v26, %v107_v25  ;;  %v111_v31 = vld [vmem:[#allocation2 + $0x60] sm:$0xff]  ;;  %v112_v32 = vld [vmem:[#allocation2 + $0x68] sm:$0xff]  ;;  %v120_v33 = vpack.c.bf16 %v110_v30, %v109_v29  ;;  %v113_v35 = vld [vmem:[#allocation2 + $0x70] sm:$0xff] }
  0x64   :  { %1503 = vmatpush3.bf16.msra.mxu0 %v1702_v2  ;;  %1534 = vmatprep.subr.bf16.mxu1 %v1710_v11  ;;  %v121_v34 = vpack.c.bf16 %v112_v32, %v111_v31  ;;  %v114_v36 = vld [vmem:[#allocation2 + $0x78] sm:$0xff]  ;;  %v1714_v38 = vld [vmem:[#allocation8 + $0x30] sm:$0xff]   ;;  %v1357_v40 = vld [vmem:[%s2259_s3] ss:$0 sm:$0xff] }
  0x65   :  { %1504 = vmatprep.subr.bf16.mxu0 %v1703_v3  ;;  %v122_v37 = vpack.c.bf16 %v114_v36, %v113_v35  ;;  %v1715_v39 = vld [vmem:[#allocation8 + $0x38] sm:$0xff]   ;;  %v1725_v35 = vld [vmem:[#allocation8 + $0x48] sm:$0xff]   ;;  %v1726_v36 = vld [vmem:[#allocation8 + $0x50] sm:$0xff]  }
  0x67   :  { %1535 = vmatpush3.bf16.msra.mxu1 %v1710_v11 }
  0x68   :  { %1505 = vmatpush3.bf16.msra.mxu0 %v1703_v3  ;;  %1536 = vmatprep.subr.bf16.mxu1 %v1711_v13 }
  0x69   :  { %1506 = vmatprep.subr.bf16.mxu0 %v1704_v7 }
  0x6b   :  { %1537 = vmatpush3.bf16.msra.mxu1 %v1711_v13 }
  0x6c   :  { %1507 = vmatpush3.bf16.msra.mxu0 %v1704_v7  ;;  %1538 = vmatprep.subr.bf16.mxu1 %v1712_v15 }
  0x6d   :  { %1508 = vmatprep.subr.bf16.mxu0 %v1705_v10 }
  0x6f   :  { %1539 = vmatpush3.bf16.msra.mxu1 %v1712_v15 }
  0x70   :  { %1509 = vmatpush3.bf16.msra.mxu0 %v1705_v10  ;;  %1540 = vmatprep.subr.bf16.mxu1 %v1713_v20 }
  0x71   :  { %1510 = vmatprep.subr.bf16.mxu0 %v1706_v12 }
  0x73   :  { %1541 = vmatpush3.bf16.msra.mxu1 %v1713_v20 }
  0x74   :  { %1511 = vmatpush3.bf16.msra.mxu0 %v1706_v12  ;;  %1542 = vmatprep.subr.bf16.mxu1 %v1714_v38 }
  0x75   :  { %1512 = vmatprep.subr.bf16.mxu0 %v1707_v14 }
  0x77   :  { %1543 = vmatpush3.bf16.msra.mxu1 %v1714_v38  ;;  %v1728_v38 = vld [vmem:[#allocation8 + $0x60] sm:$0xff]  }
  0x78   :  { %1513 = vmatpush3.bf16.msra.mxu0 %v1707_v14  ;;  %1544 = vmatprep.subr.bf16.mxu1 %v1715_v39 }
  0x7b   :  { %1515 = vmatmul.mubr.bf16.vlgmr.msra.gmra.mrb[0].mxu0 %v116_v21  ;;  %1545 = vmatpush3.bf16.msra.mxu1 %v1715_v39  ;;  %v1729_v39 = vld [vmem:[#allocation8 + $0x68] sm:$0xff]  }
  0x7c   :  { %1518 = vmatprep.mubr.bf16.mxu0 %v117_v22 }
  0x83   :  { %1519 = vmatmul.mubr.bf16.gmra.mrb[4].mxu0 %v118_v27 }
  0x84   :  { %1522 = vmatprep.mubr.bf16.mxu0 %v119_v28 }
  0x8b   :  { %1523 = vmatmul.mubr.bf16.gmra.mrb[8].mxu0 %v120_v33  ;;  %v2077_v33 = vld [vmem:[#allocation5] sm:$0xff]  }
  0x8c   :  { %1526 = vmatprep.mubr.bf16.mxu0 %v121_v34  ;;  %v1724_v34 = vld [vmem:[#allocation8 + $0x40] sm:$0xff]  }
  0x8d   :  { %1594 = vmatprep.subr.bf16.mxu1 %v1724_v34 }
  0x93   :  { %1527 = vmatmul.mubr.bf16.gmra.mrb[12].mxu0 %v122_v37  ;;  %v1727_v37 = vld [vmem:[#allocation8 + $0x58] sm:$0xff]  }
  0x94   :  { %1578 = vmatprep.mubr.bf16.mxu0 %v2077_v33 }
 0x14e   :  { %v1516_v41 = vpop.f32.mrb[0].mxu0 }
 0x14f   :  { %v237_v42 = vadd.f32 %v1516_v41, %v1357_v40  ;;  %v228_v43 = vpop.f32.mrb[1].mxu0 }
 0x150   :  { %v229_v44 = vadd.f32 %v1357_v40, %v228_v43  ;;  %v1517_v45 = vpop.f32.mrb[2].mxu0 }
 0x151   :  { %v240_v46 = vadd.f32 %v1517_v45, %v1357_v40  ;;  %v231_v47 = vpop.f32.mrb[3].mxu0  ;;  %v293_v49 = vmax.f32 %v237_v42, 0.0 }
 0x152   :  { %v232_v48 = vadd.f32 %v1357_v40, %v231_v47  ;;  %v291_v51 = vmax.f32 %v229_v44, 0.0 }
 0x153   :  { %v294_v50 = vmax.f32 %v240_v46, 0.0 }
 0x154   :  { %v292_v52 = vmax.f32 %v232_v48, 0.0 }
 0x155   :  { %v324_v53 = vpack.c.bf16 %v294_v50, %v293_v49 }
 0x156   :  { %v1520_v54 = vpop.f32.mrb[4].mxu0  ;;  %v323_v55 = vpack.c.bf16 %v292_v52, %v291_v51 }
 0x157   :  { %v253_v56 = vadd.f32 %v1520_v54, %v1357_v40  ;;  %v244_v57 = vpop.f32.mrb[5].mxu0 }
 0x158   :  { %v245_v58 = vadd.f32 %v1357_v40, %v244_v57  ;;  %v1521_v59 = vpop.f32.mrb[6].mxu0  ;;  %1546 = vmatprep.mubr.bf16.mxu1 %v323_v55 }
 0x159   :  { %v256_v60 = vadd.f32 %v1521_v59, %v1357_v40  ;;  %v247_v61 = vpop.f32.mrb[7].mxu0  ;;  %1547 = vmatmul.mubr.bf16.vlgmr.msra.gmra.mrb[0].mxu1 %v324_v53  ;;  %v297_v63 = vmax.f32 %v253_v56, 0.0 }
 0x15a   :  { %v248_v62 = vadd.f32 %v1357_v40, %v247_v61  ;;  %v295_v1 = vmax.f32 %v245_v58, 0.0  ;;  %1595 = vmatpush3.bf16.msra.mxu1 %v1724_v34 }
 0x15b   :  { %v298_v0 = vmax.f32 %v256_v60, 0.0  ;;  %1596 = vmatprep.subr.bf16.mxu1 %v1725_v35 }
 0x15c   :  { %v296_v2 = vmax.f32 %v248_v62, 0.0 }
 0x15d   :  { %v326_v3 = vpack.c.bf16 %v298_v0, %v297_v63  ;;  %v2080_v0 = vld [vmem:[#allocation5 + $0x8] sm:$0xff]  }
 0x15e   :  { %v325_v4 = vpack.c.bf16 %v296_v2, %v295_v1  ;;  %v1524_v5 = vpop.f32.mrb[8].mxu0  ;;  %1597 = vmatpush3.bf16.msra.mxu1 %v1725_v35  ;;  %v2082_v1 = vld [vmem:[#allocation5 + $0x10] sm:$0xff]   ;;  %v2086_v2 = vld [vmem:[#allocation5 + $0x18] sm:$0xff]  }
 0x15f   :  { %v269_v6 = vadd.f32 %v1524_v5, %v1357_v40  ;;  %v260_v7 = vpop.f32.mrb[9].mxu0  ;;  %1598 = vmatprep.subr.bf16.mxu1 %v1726_v36  ;;  %v2094_v5 = vld [vmem:[#allocation5 + $0x30] sm:$0xff]  }
 0x160   :  { %v261_v8 = vadd.f32 %v1357_v40, %v260_v7  ;;  %v1525_v9 = vpop.f32.mrb[10].mxu0  ;;  %1550 = vmatprep.mubr.bf16.mxu1 %v325_v4  ;;  %v2092_v4 = vld [vmem:[#allocation5 + $0x28] sm:$0xff]   ;;  %v1730_v7 = vld [vmem:[#allocation8 + $0x70] sm:$0xff]  }
 0x161   :  { %v272_v10 = vadd.f32 %v1525_v9, %v1357_v40  ;;  %v263_v11 = vpop.f32.mrb[11].mxu0  ;;  %1551 = vmatmul.mubr.bf16.gmra.mrb[4].mxu1 %v326_v3  ;;  %v301_v13 = vmax.f32 %v269_v6, 0.0  ;;  %v2088_v3 = vld [vmem:[#allocation5 + $0x20] sm:$0xff]   ;;  %v2098_v6 = vld [vmem:[#allocation5 + $0x38] sm:$0xff]  }
 0x162   :  { %v264_v12 = vadd.f32 %v1357_v40, %v263_v11  ;;  %v299_v15 = vmax.f32 %v261_v8, 0.0  ;;  %1599 = vmatpush3.bf16.msra.mxu1 %v1726_v36  ;;  %v1731_v8 = vld [vmem:[#allocation8 + $0x78] sm:$0xff]   ;;  %v1374_v9 = vld [vmem:[%s2261_s5] ss:$0 sm:$0xff] }
 0x163   :  { %v302_v14 = vmax.f32 %v272_v10, 0.0  ;;  %1600 = vmatprep.subr.bf16.mxu1 %v1727_v37 }
 0x164   :  { %v300_v16 = vmax.f32 %v264_v12, 0.0 }
 0x165   :  { %v328_v17 = vpack.c.bf16 %v302_v14, %v301_v13 }
 0x166   :  { %v327_v18 = vpack.c.bf16 %v300_v16, %v299_v15  ;;  %v1528_v19 = vpop.f32.mrb[12].mxu0  ;;  %1601 = vmatpush3.bf16.msra.mxu1 %v1727_v37 }
 0x167   :  { %v285_v20 = vadd.f32 %v1528_v19, %v1357_v40  ;;  %v276_v21 = vpop.f32.mrb[13].mxu0  ;;  %1602 = vmatprep.subr.bf16.mxu1 %v1728_v38 }
 0x168   :  { %v277_v22 = vadd.f32 %v1357_v40, %v276_v21  ;;  %v1529_v23 = vpop.f32.mrb[14].mxu0  ;;  %1554 = vmatprep.mubr.bf16.mxu1 %v327_v18 }
 0x169   :  { %v288_v24 = vadd.f32 %v1529_v23, %v1357_v40  ;;  %v279_v25 = vpop.f32.mrb[15].mxu0  ;;  %1555 = vmatmul.mubr.bf16.gmra.mrb[8].mxu1 %v328_v17  ;;  %v305_v27 = vmax.f32 %v285_v20, 0.0 }
 0x16a   :  { %v280_v26 = vadd.f32 %v1357_v40, %v279_v25  ;;  %v303_v29 = vmax.f32 %v277_v22, 0.0  ;;  %1603 = vmatpush3.bf16.msra.mxu1 %v1728_v38 }
 0x16b   :  { %v306_v28 = vmax.f32 %v288_v24, 0.0  ;;  %1604 = vmatprep.subr.bf16.mxu1 %v1729_v39 }
 0x16c   :  { %v304_v30 = vmax.f32 %v280_v26, 0.0 }
 0x16d   :  { %v330_v31 = vpack.c.bf16 %v306_v28, %v305_v27 }
 0x16e   :  { %v329_v32 = vpack.c.bf16 %v304_v30, %v303_v29  ;;  %1605 = vmatpush3.bf16.msra.mxu1 %v1729_v39 }
 0x16f   :  { %1606 = vmatprep.subr.bf16.mxu1 %v1730_v7 }
 0x170   :  { %1558 = vmatprep.mubr.bf16.mxu1 %v329_v32 }
 0x171   :  { %1559 = vmatmul.mubr.bf16.gmra.mrb[12].mxu1 %v330_v31 }
 0x172   :  { %1607 = vmatpush3.bf16.msra.mxu1 %v1730_v7 }
 0x173   :  { %1608 = vmatprep.subr.bf16.mxu1 %v1731_v8 }
 0x176   :  { %1609 = vmatpush3.bf16.msra.mxu1 %v1731_v8 }
 0x22c   :  { %v1548_v40 = vpop.f32.mrb[0].mxu1 }
 0x22d   :  { %v429_v41 = vpop.f32.mrb[1].mxu1 }
 0x22e   :  { %v1549_v42 = vpop.f32.mrb[2].mxu1 }
 0x22f   :  { %v493_v43 = vpack.c.bf16 %v1549_v42, %v1548_v40  ;;  %v432_v44 = vpop.f32.mrb[3].mxu1 }
 0x230   :  { %v492_v45 = vpack.c.bf16 %v432_v44, %v429_v41 }
 0x232   :  { %1562 = vmatprep.subr.bf16.mxu0 %v492_v45 }
 0x233   :  { %1563 = vmatpush3.bf16.msra.mxu0 %v492_v45 }
 0x234   :  { %v1552_v46 = vpop.f32.mrb[4].mxu1  ;;  %1564 = vmatprep.subr.bf16.mxu0 %v493_v43 }
 0x235   :  { %v445_v47 = vpop.f32.mrb[5].mxu1 }
 0x236   :  { %v1553_v48 = vpop.f32.mrb[6].mxu1 }
 0x237   :  { %v495_v49 = vpack.c.bf16 %v1553_v48, %v1552_v46  ;;  %v448_v50 = vpop.f32.mrb[7].mxu1  ;;  %1565 = vmatpush3.bf16.msra.mxu0 %v493_v43 }
 0x238   :  { %v494_v51 = vpack.c.bf16 %v448_v50, %v445_v47 }
 0x23a   :  { %1566 = vmatprep.subr.bf16.mxu0 %v494_v51 }
 0x23b   :  { %1567 = vmatpush3.bf16.msra.mxu0 %v494_v51 }
 0x23c   :  { %v1556_v52 = vpop.f32.mrb[8].mxu1  ;;  %1568 = vmatprep.subr.bf16.mxu0 %v495_v49 }
 0x23d   :  { %v461_v53 = vpop.f32.mrb[9].mxu1 }
 0x23e   :  { %v1557_v54 = vpop.f32.mrb[10].mxu1 }
 0x23f   :  { %v497_v55 = vpack.c.bf16 %v1557_v54, %v1556_v52  ;;  %v464_v56 = vpop.f32.mrb[11].mxu1  ;;  %1569 = vmatpush3.bf16.msra.mxu0 %v495_v49 }
 0x240   :  { %v496_v57 = vpack.c.bf16 %v464_v56, %v461_v53 }
 0x242   :  { %1570 = vmatprep.subr.bf16.mxu0 %v496_v57 }
 0x243   :  { %1571 = vmatpush3.bf16.msra.mxu0 %v496_v57 }
 0x244   :  { %v1560_v58 = vpop.f32.mrb[12].mxu1  ;;  %1572 = vmatprep.subr.bf16.mxu0 %v497_v55 }
 0x245   :  { %v477_v59 = vpop.f32.mrb[13].mxu1 }
 0x246   :  { %v1561_v60 = vpop.f32.mrb[14].mxu1 }
 0x247   :  { %v499_v61 = vpack.c.bf16 %v1561_v60, %v1560_v58  ;;  %v480_v62 = vpop.f32.mrb[15].mxu1  ;;  %1573 = vmatpush3.bf16.msra.mxu0 %v497_v55 }
 0x248   :  { %v498_v63 = vpack.c.bf16 %v480_v62, %v477_v59 }
 0x24a   :  { %1574 = vmatprep.subr.bf16.mxu0 %v498_v63 }
 0x24b   :  { %1575 = vmatpush3.bf16.msra.mxu0 %v498_v63 }
 0x24c   :  { %1576 = vmatprep.subr.bf16.mxu0 %v499_v61 }
 0x24f   :  { %1577 = vmatpush3.bf16.msra.mxu0 %v499_v61 }
 0x252   :  { %1579 = vmatmul.mubr.bf16.vlgmr.msra.gmra.mrb[16].mxu0 %v2080_v0 }
 0x253   :  { %1582 = vmatprep.mubr.bf16.mxu0 %v2082_v1 }
 0x25a   :  { %1583 = vmatmul.mubr.bf16.gmra.mrb[20].mxu0 %v2086_v2 }
 0x25b   :  { %1586 = vmatprep.mubr.bf16.mxu0 %v2088_v3 }
 0x262   :  { %1587 = vmatmul.mubr.bf16.gmra.mrb[24].mxu0 %v2092_v4 }
 0x263   :  { %1590 = vmatprep.mubr.bf16.mxu0 %v2094_v5 }
 0x26a   :  { %1591 = vmatmul.mubr.bf16.gmra.mrb[28].mxu0 %v2098_v6 }
 0x26b   :  { %1642 = vmatprep.mubr.bf16.mxu0 %v2077_v33 }
 0x325   :  { %v1580_v10 = vpop.f32.mrb[16].mxu0 }
 0x326   :  { %v598_v11 = vadd.f32 %v1580_v10, %v1374_v9  ;;  %v589_v12 = vpop.f32.mrb[17].mxu0  ;;  %v1732_v10 = vld [vmem:[#allocation10] sm:$0xff]  }
 0x327   :  { %v590_v13 = vadd.f32 %v1374_v9, %v589_v12  ;;  %v1581_v14 = vpop.f32.mrb[18].mxu0  ;;  %1658 = vmatprep.subr.bf16.mxu1 %v1732_v10  ;;  %v1734_v12 = vld [vmem:[#allocation10 + $0x10] sm:$0xff]  }
 0x328   :  { %v601_v15 = vadd.f32 %v1581_v14, %v1374_v9  ;;  %v592_v16 = vpop.f32.mrb[19].mxu0  ;;  %v654_v18 = vmax.f32 %v598_v11, 0.0  ;;  %v1733_v11 = vld [vmem:[#allocation10 + $0x8] sm:$0xff]  }
 0x329   :  { %v593_v17 = vadd.f32 %v1374_v9, %v592_v16  ;;  %v652_v20 = vmax.f32 %v590_v13, 0.0  ;;  %v1735_v13 = vld [vmem:[#allocation10 + $0x18] sm:$0xff]   ;;  %v1737_v14 = vld [vmem:[#allocation10 + $0x28] sm:$0xff]  }
 0x32a   :  { %v655_v19 = vmax.f32 %v601_v15, 0.0 }
 0x32b   :  { %v653_v21 = vmax.f32 %v593_v17, 0.0 }
 0x32c   :  { %v669_v22 = vpack.c.bf16 %v655_v19, %v654_v18 }
 0x32d   :  { %v668_v23 = vpack.c.bf16 %v653_v21, %v652_v20  ;;  %v1584_v24 = vpop.f32.mrb[20].mxu0 }
 0x32e   :  { %v614_v25 = vadd.f32 %v1584_v24, %v1374_v9  ;;  %v605_v26 = vpop.f32.mrb[21].mxu0 }
 0x32f   :  { %v606_v27 = vadd.f32 %v1374_v9, %v605_v26  ;;  %v1585_v28 = vpop.f32.mrb[22].mxu0  ;;  %1610 = vmatprep.mubr.bf16.mxu1 %v668_v23 }
 0x330   :  { %v617_v29 = vadd.f32 %v1585_v28, %v1374_v9  ;;  %v608_v30 = vpop.f32.mrb[23].mxu0  ;;  %1611 = vmatmul.mubr.bf16.vlgmr.msra.gmra.mrb[16].mxu1 %v669_v22  ;;  %v658_v32 = vmax.f32 %v614_v25, 0.0 }
 0x331   :  { %v609_v31 = vadd.f32 %v1374_v9, %v608_v30  ;;  %v656_v34 = vmax.f32 %v606_v27, 0.0  ;;  %1659 = vmatpush3.bf16.msra.mxu1 %v1732_v10 }
 0x332   :  { %v659_v33 = vmax.f32 %v617_v29, 0.0  ;;  %1660 = vmatprep.subr.bf16.mxu1 %v1733_v11 }
 0x333   :  { %v657_v35 = vmax.f32 %v609_v31, 0.0 }
 0x334   :  { %v671_v36 = vpack.c.bf16 %v659_v33, %v658_v32 }
 0x335   :  { %v670_v37 = vpack.c.bf16 %v657_v35, %v656_v34  ;;  %v1588_v38 = vpop.f32.mrb[24].mxu0  ;;  %1661 = vmatpush3.bf16.msra.mxu1 %v1733_v11 }
 0x336   :  { %v630_v39 = vadd.f32 %v1588_v38, %v1374_v9  ;;  %v621_v40 = vpop.f32.mrb[25].mxu0  ;;  %1662 = vmatprep.subr.bf16.mxu1 %v1734_v12 }
 0x337   :  { %v622_v41 = vadd.f32 %v1374_v9, %v621_v40  ;;  %v1589_v42 = vpop.f32.mrb[26].mxu0  ;;  %1614 = vmatprep.mubr.bf16.mxu1 %v670_v37  ;;  %v1739_v40 = vld [vmem:[#allocation10 + $0x38] sm:$0xff]  }
 0x338   :  { %v633_v43 = vadd.f32 %v1589_v42, %v1374_v9  ;;  %v624_v44 = vpop.f32.mrb[27].mxu0  ;;  %1615 = vmatmul.mubr.bf16.gmra.mrb[20].mxu1 %v671_v36  ;;  %v662_v46 = vmax.f32 %v630_v39, 0.0  ;;  %v1738_v39 = vld [vmem:[#allocation10 + $0x30] sm:$0xff]  }
 0x339   :  { %v625_v45 = vadd.f32 %v1374_v9, %v624_v44  ;;  %v660_v48 = vmax.f32 %v622_v41, 0.0  ;;  %1663 = vmatpush3.bf16.msra.mxu1 %v1734_v12 }
 0x33a   :  { %v663_v47 = vmax.f32 %v633_v43, 0.0  ;;  %1664 = vmatprep.subr.bf16.mxu1 %v1735_v13 }
 0x33b   :  { %v661_v49 = vmax.f32 %v625_v45, 0.0 }
 0x33c   :  { %v673_v50 = vpack.c.bf16 %v663_v47, %v662_v46 }
 0x33d   :  { %v672_v51 = vpack.c.bf16 %v661_v49, %v660_v48  ;;  %v1592_v52 = vpop.f32.mrb[28].mxu0  ;;  %1665 = vmatpush3.bf16.msra.mxu1 %v1735_v13 }
 0x33e   :  { %v646_v53 = vadd.f32 %v1592_v52, %v1374_v9  ;;  %v637_v54 = vpop.f32.mrb[29].mxu0 }
 0x33f   :  { %v638_v55 = vadd.f32 %v1374_v9, %v637_v54  ;;  %v1593_v56 = vpop.f32.mrb[30].mxu0  ;;  %1618 = vmatprep.mubr.bf16.mxu1 %v672_v51 }
 0x340   :  { %v649_v57 = vadd.f32 %v1593_v56, %v1374_v9  ;;  %v640_v58 = vpop.f32.mrb[31].mxu0  ;;  %1619 = vmatmul.mubr.bf16.gmra.mrb[24].mxu1 %v673_v50  ;;  %v666_v60 = vmax.f32 %v646_v53, 0.0 }
 0x341   :  { %v641_v59 = vadd.f32 %v1374_v9, %v640_v58  ;;  %v664_v62 = vmax.f32 %v638_v55, 0.0  ;;  %v1736_v9 = vld [vmem:[#allocation10 + $0x20] sm:$0xff]  }
 0x342   :  { %v667_v61 = vmax.f32 %v649_v57, 0.0  ;;  %1666 = vmatprep.subr.bf16.mxu1 %v1736_v9 }
 0x343   :  { %v665_v63 = vmax.f32 %v641_v59, 0.0  ;;  %1667 = vmatpush3.bf16.msra.mxu1 %v1736_v9 }
 0x344   :  { %v675_v7 = vpack.c.bf16 %v667_v61, %v666_v60  ;;  %1668 = vmatprep.subr.bf16.mxu1 %v1737_v14 }
 0x345   :  { %v674_v8 = vpack.c.bf16 %v665_v63, %v664_v62 }
 0x347   :  { %1622 = vmatprep.mubr.bf16.mxu1 %v674_v8  ;;  %1669 = vmatpush3.bf16.msra.mxu1 %v1737_v14 }
 0x348   :  { %1623 = vmatmul.mubr.bf16.gmra.mrb[28].mxu1 %v675_v7  ;;  %1670 = vmatprep.subr.bf16.mxu1 %v1738_v39 }
 0x34b   :  { %1671 = vmatpush3.bf16.msra.mxu1 %v1738_v39 }
 0x34c   :  { %1672 = vmatprep.subr.bf16.mxu1 %v1739_v40 }
 0x34f   :  { %1673 = vmatpush3.bf16.msra.mxu1 %v1739_v40 }
 0x403   :  { %v1612_v15 = vpop.f32.mrb[16].mxu1 }
 0x404   :  { %v775_v16 = vpop.f32.mrb[17].mxu1 }
 0x405   :  { %v1613_v17 = vpop.f32.mrb[18].mxu1 }
 0x406   :  { %v839_v18 = vpack.c.bf16 %v1613_v17, %v1612_v15  ;;  %v778_v19 = vpop.f32.mrb[19].mxu1 }
 0x407   :  { %v838_v20 = vpack.c.bf16 %v778_v19, %v775_v16 }
 0x409   :  { %1626 = vmatprep.subr.bf16.mxu0 %v838_v20 }
 0x40a   :  { %1627 = vmatpush3.bf16.msra.mxu0 %v838_v20 }
 0x40b   :  { %v1616_v21 = vpop.f32.mrb[20].mxu1  ;;  %1628 = vmatprep.subr.bf16.mxu0 %v839_v18 }
 0x40c   :  { %v791_v22 = vpop.f32.mrb[21].mxu1 }
 0x40d   :  { %v1617_v23 = vpop.f32.mrb[22].mxu1 }
 0x40e   :  { %v841_v24 = vpack.c.bf16 %v1617_v23, %v1616_v21  ;;  %v794_v25 = vpop.f32.mrb[23].mxu1  ;;  %1629 = vmatpush3.bf16.msra.mxu0 %v839_v18 }
 0x40f   :  { %v840_v26 = vpack.c.bf16 %v794_v25, %v791_v22 }
 0x411   :  { %1630 = vmatprep.subr.bf16.mxu0 %v840_v26 }
 0x412   :  { %1631 = vmatpush3.bf16.msra.mxu0 %v840_v26 }
 0x413   :  { %v1620_v27 = vpop.f32.mrb[24].mxu1  ;;  %1632 = vmatprep.subr.bf16.mxu0 %v841_v24 }
 0x414   :  { %v807_v28 = vpop.f32.mrb[25].mxu1 }
 0x415   :  { %v1621_v29 = vpop.f32.mrb[26].mxu1 }
 0x416   :  { %v843_v30 = vpack.c.bf16 %v1621_v29, %v1620_v27  ;;  %v810_v31 = vpop.f32.mrb[27].mxu1  ;;  %1633 = vmatpush3.bf16.msra.mxu0 %v841_v24 }
 0x417   :  { %v842_v32 = vpack.c.bf16 %v810_v31, %v807_v28 }
 0x419   :  { %1634 = vmatprep.subr.bf16.mxu0 %v842_v32 }
 0x41a   :  { %1635 = vmatpush3.bf16.msra.mxu0 %v842_v32 }
 0x41b   :  { %v1624_v33 = vpop.f32.mrb[28].mxu1  ;;  %1636 = vmatprep.subr.bf16.mxu0 %v843_v30 }
 0x41c   :  { %v823_v34 = vpop.f32.mrb[29].mxu1 }
 0x41d   :  { %v1625_v35 = vpop.f32.mrb[30].mxu1 }
 0x41e   :  { %v845_v36 = vpack.c.bf16 %v1625_v35, %v1624_v33  ;;  %v826_v37 = vpop.f32.mrb[31].mxu1  ;;  %1637 = vmatpush3.bf16.msra.mxu0 %v843_v30 }
 0x41f   :  { %v844_v38 = vpack.c.bf16 %v826_v37, %v823_v34  ;;  %v1143_v34 = vlaneseq }
 0x421   :  { %1638 = vmatprep.subr.bf16.mxu0 %v844_v38  ;;  %v2115_v35 = vand.u32 127, %v1143_v34 }
 0x422   :  { %1639 = vmatpush3.bf16.msra.mxu0 %v844_v38 }
 0x423   :  { %1640 = vmatprep.subr.bf16.mxu0 %v845_v36  ;;  %vm1145_vm0 = vcmp.lt.s32.totalorder %v2115_v35, 7 }
 0x426   :  { %1641 = vmatpush3.bf16.msra.mxu0 %v845_v36  ;;  %v1393_v36 = vld [vmem:[%s2263_s7] ss:$0 sm:$0xff]  ;;  %s1953_s7 = smov [#allocation11]  }
 0x427   :  { %s1343_s30 = sshll.u32 %s1953_s7, 4  ;;  %s1344_s30 = int_to_ptr.vmem [resolvable:$true] %s1343_s30 }
 0x428   :  { %s1914_s1 = scalar_lea.vmem %s1344_s30, 2048  ;;  %p1919_p13 = scmp.lt.s32.totalorder %s1344_s30, %s1344_s30 }
 0x429   :  { %1643 = vmatmul.mubr.bf16.vlgmr.msra.gmra.mrb[32].mxu0 %v2080_v0  ;;  %v1392_v0 = vld [vmem:[%s2261_s5 + $0x1] ss:$0 sm:$0xff]  ;;  %p1915_p12 = scmp.ne.s32.totalorder %s1344_s30, %s1914_s1  ;;  %p1920_p0 = scmp.lt.s32.totalorder %s1914_s1, %s1914_s1 }
 0x42a   :  { %1646 = vmatprep.mubr.bf16.mxu0 %v2082_v1 }
 0x42b   :  { %p1921_p1 = por %p1920_p0, %p1919_p13 }
 0x42d   :  { %p1922_p2 = pnand %p1921_p1, %p1915_p12 }
 0x431   :  { %1647 = vmatmul.mubr.bf16.gmra.mrb[36].mxu0 %v2086_v2 }
 0x432   :  { %1650 = vmatprep.mubr.bf16.mxu0 %v2088_v3 }
 0x439   :  { %1651 = vmatmul.mubr.bf16.gmra.mrb[40].mxu0 %v2092_v4 }
 0x43a   :  { %1654 = vmatprep.mubr.bf16.mxu0 %v2094_v5 }
 0x441   :  { %1655 = vmatmul.mubr.bf16.gmra.mrb[44].mxu0 %v2098_v6 }
 0x4fc   :  { %v1644_v1 = vpop.f32.mrb[32].mxu0 }
 0x4fd   :  { %v897_v2 = vadd.f32 %v1644_v1, %v1392_v0  ;;  %v888_v41 = vpop.f32.mrb[33].mxu0 }
 0x4fe   :  { %v889_v3 = vadd.f32 %v1392_v0, %v888_v41  ;;  %v1645_v42 = vpop.f32.mrb[34].mxu0 }
 0x4ff   :  { %v900_v4 = vadd.f32 %v1645_v42, %v1392_v0  ;;  %v891_v43 = vpop.f32.mrb[35].mxu0  ;;  %v953_v44 = vmax.f32 %v897_v2, 0.0 }
 0x500   :  { %v892_v5 = vadd.f32 %v1392_v0, %v891_v43  ;;  %v951_v45 = vmax.f32 %v889_v3, 0.0 }
 0x501   :  { %v954_v6 = vmax.f32 %v900_v4, 0.0 }
 0x502   :  { %v952_v46 = vmax.f32 %v892_v5, 0.0 }
 0x503   :  { %v968_v47 = vpack.c.bf16 %v954_v6, %v953_v44 }
 0x504   :  { %v967_v48 = vpack.c.bf16 %v952_v46, %v951_v45  ;;  %v1648_v49 = vpop.f32.mrb[36].mxu0 }
 0x505   :  { %v913_v50 = vadd.f32 %v1648_v49, %v1392_v0  ;;  %v904_v51 = vpop.f32.mrb[37].mxu0 }
 0x506   :  { %v905_v52 = vadd.f32 %v1392_v0, %v904_v51  ;;  %v1649_v53 = vpop.f32.mrb[38].mxu0  ;;  %1674 = vmatprep.mubr.bf16.mxu1 %v967_v48 }
 0x507   :  { %v957_v54 = vmax.f32 %v913_v50, 0.0  ;;  %v916_v55 = vadd.f32 %v1649_v53, %v1392_v0  ;;  %v907_v56 = vpop.f32.mrb[39].mxu0  ;;  %1675 = vmatmul.mubr.bf16.vlgmr.msra.gmra.mrb[32].mxu1 %v968_v47 }
 0x508   :  { %v908_v57 = vadd.f32 %v1392_v0, %v907_v56  ;;  %v955_v59 = vmax.f32 %v905_v52, 0.0 }
 0x509   :  { %v958_v58 = vmax.f32 %v916_v55, 0.0 }
 0x50a   :  { %v956_v60 = vmax.f32 %v908_v57, 0.0 }
 0x50b   :  { %v970_v61 = vpack.c.bf16 %v958_v58, %v957_v54 }
 0x50c   :  { %v969_v62 = vpack.c.bf16 %v956_v60, %v955_v59  ;;  %v1652_v63 = vpop.f32.mrb[40].mxu0 }
 0x50d   :  { %v929_v7 = vadd.f32 %v1652_v63, %v1392_v0  ;;  %v920_v8 = vpop.f32.mrb[41].mxu0 }
 0x50e   :  { %v921_v10 = vadd.f32 %v1392_v0, %v920_v8  ;;  %v1653_v11 = vpop.f32.mrb[42].mxu0  ;;  %1678 = vmatprep.mubr.bf16.mxu1 %v969_v62 }
 0x50f   :  { %v961_v12 = vmax.f32 %v929_v7, 0.0  ;;  %v932_v13 = vadd.f32 %v1653_v11, %v1392_v0  ;;  %v923_v9 = vpop.f32.mrb[43].mxu0  ;;  %1679 = vmatmul.mubr.bf16.gmra.mrb[36].mxu1 %v970_v61 }
 0x510   :  { %v924_v14 = vadd.f32 %v1392_v0, %v923_v9  ;;  %v959_v16 = vmax.f32 %v921_v10, 0.0 }
 0x511   :  { %v962_v15 = vmax.f32 %v932_v13, 0.0 }
 0x512   :  { %v960_v17 = vmax.f32 %v924_v14, 0.0 }
 0x513   :  { %v972_v18 = vpack.c.bf16 %v962_v15, %v961_v12 }
 0x514   :  { %v971_v19 = vpack.c.bf16 %v960_v17, %v959_v16  ;;  %v1656_v20 = vpop.f32.mrb[44].mxu0 }
 0x515   :  { %v945_v21 = vadd.f32 %v1656_v20, %v1392_v0  ;;  %v936_v22 = vpop.f32.mrb[45].mxu0 }
 0x516   :  { %v937_v23 = vadd.f32 %v1392_v0, %v936_v22  ;;  %v1657_v24 = vpop.f32.mrb[46].mxu0  ;;  %1682 = vmatprep.mubr.bf16.mxu1 %v971_v19 }
 0x517   :  { %v965_v25 = vmax.f32 %v945_v21, 0.0  ;;  %v948_v26 = vadd.f32 %v1657_v24, %v1392_v0  ;;  %v939_v27 = vpop.f32.mrb[47].mxu0  ;;  %1683 = vmatmul.mubr.bf16.gmra.mrb[40].mxu1 %v972_v18 }
 0x518   :  { %v940_v28 = vadd.f32 %v1392_v0, %v939_v27  ;;  %v963_v30 = vmax.f32 %v937_v23, 0.0 }
 0x519   :  { %v966_v29 = vmax.f32 %v948_v26, 0.0 }
 0x51a   :  { %v964_v31 = vmax.f32 %v940_v28, 0.0 }
 0x51b   :  { %v974_v32 = vpack.c.bf16 %v966_v29, %v965_v25 }
 0x51c   :  { %v973_v33 = vpack.c.bf16 %v964_v31, %v963_v30 }
 0x51e   :  { %1686 = vmatprep.mubr.bf16.mxu1 %v973_v33 }
 0x51f   :  { %1687 = vmatmul.mubr.bf16.gmra.mrb[44].mxu1 %v974_v32 }
 0x5da   :  { %v1676_v37 = vpop.f32.mrb[32].mxu1 }
 0x5db   :  { %v1089_v38 = vadd.f32 %v1676_v37, %v1393_v36  ;;  %v1080_v39 = vpop.f32.mrb[33].mxu1 }
 0x5dc   :  { %v1081_v40 = vadd.f32 %v1393_v36, %v1080_v39  ;;  %v1677_v0 = vpop.f32.mrb[34].mxu1 }
 0x5dd   :  { %v1092_v1 = vadd.f32 %v1677_v0, %v1393_v36  ;;  %v1083_v2 = vpop.f32.mrb[35].mxu1  ;;  %v1148_v41 = vsel %vm1145_vm0, %v1089_v38, -1e+30 }
 0x5de   :  { %v1084_v3 = vadd.f32 %v1393_v36, %v1083_v2  ;;  %1166 = vmax.xlane.f32.xlu1 %v1148_v41  ;;  %v1146_v42 = vsel %vm1145_vm0, %v1081_v40, -1e+30 }
 0x5df   :  { %1162 = vmax.xlane.f32.xlu0 %v1146_v42  ;;  %v1149_v4 = vsel %vm1145_vm0, %v1092_v1, -1e+30 }
 0x5e0   :  { %v1147_v5 = vsel %vm1145_vm0, %v1084_v3, -1e+30 }
 0x5e2   :  { %1168 = vmax.xlane.f32.xlu1 %v1149_v4  ;;  %v1680_v43 = vpop.f32.mrb[36].mxu1 }
 0x5e3   :  { %v1105_v44 = vadd.f32 %v1680_v43, %v1393_v36  ;;  %v1096_v6 = vpop.f32.mrb[37].mxu1  ;;  %1164 = vmax.xlane.f32.xlu0 %v1147_v5 }
 0x5e4   :  { %v1681_v45 = vpop.f32.mrb[38].mxu1  ;;  %v1097_v49 = vadd.f32 %v1393_v36, %v1096_v6 }
 0x5e5   :  { %v1108_v46 = vadd.f32 %v1681_v45, %v1393_v36  ;;  %v1099_v47 = vpop.f32.mrb[39].mxu1  ;;  %v1152_v48 = vsel %vm1145_vm0, %v1105_v44, -1e+30 }
 0x5e6   :  { %v1100_v50 = vadd.f32 %v1393_v36, %v1099_v47  ;;  %v1150_v53 = vsel %vm1145_vm0, %v1097_v49, -1e+30 }
 0x5e7   :  { %1174 = vmax.xlane.f32.xlu0 %v1152_v48  ;;  %v1153_v51 = vsel %vm1145_vm0, %v1108_v46, -1e+30 }
 0x5e8   :  { %1176 = vmax.xlane.f32.xlu1 %v1153_v51  ;;  %v1151_v56 = vsel %vm1145_vm0, %v1100_v50, -1e+30 }
 0x5ea   :  { %v1684_v52 = vpop.f32.mrb[40].mxu1 }
 0x5eb   :  { %v1121_v54 = vadd.f32 %v1684_v52, %v1393_v36  ;;  %v1112_v55 = vpop.f32.mrb[41].mxu1  ;;  %1170 = vmax.xlane.f32.xlu0 %v1150_v53 }
 0x5ec   :  { %v1685_v57 = vpop.f32.mrb[42].mxu1  ;;  %1172 = vmax.xlane.f32.xlu1 %v1151_v56  ;;  %v1113_v61 = vadd.f32 %v1393_v36, %v1112_v55 }
 0x5ed   :  { %v1124_v58 = vadd.f32 %v1685_v57, %v1393_v36  ;;  %v1115_v59 = vpop.f32.mrb[43].mxu1  ;;  %v1156_v60 = vsel %vm1145_vm0, %v1121_v54, -1e+30 }
 0x5ee   :  { %v1116_v62 = vadd.f32 %v1393_v36, %v1115_v59  ;;  %v2143_v8 = vsel %vm1145_vm0, %v1113_v61, -1e+30 }
 0x5ef   :  { %1182 = vmax.xlane.f32.xlu0 %v1156_v60  ;;  %v1157_v63 = vsel %vm1145_vm0, %v1124_v58, -1e+30 }
 0x5f0   :  { %1184 = vmax.xlane.f32.xlu1 %v1157_v63  ;;  %v2148_v11 = vsel %vm1145_vm0, %v1116_v62, -1e+30 }
 0x5f2   :  { %v1688_v7 = vpop.f32.mrb[44].mxu1 }
 0x5f3   :  { %v1128_v10 = vpop.f32.mrb[45].mxu1  ;;  %1178 = vmax.xlane.f32.xlu0 %v2143_v8  ;;  %v1137_v14 = vadd.f32 %v1688_v7, %v1393_v36 }
 0x5f4   :  { %v1129_v12 = vadd.f32 %v1393_v36, %v1128_v10  ;;  %v1689_v13 = vpop.f32.mrb[46].mxu1  ;;  %1180 = vmax.xlane.f32.xlu1 %v2148_v11 }
 0x5f5   :  { %v1131_v9 = vpop.f32.mrb[47].mxu1  ;;  %v1140_v17 = vadd.f32 %v1689_v13, %v1393_v36  ;;  %v2163_v19 = vsel %vm1145_vm0, %v1137_v14, -1e+30 }
 0x5f6   :  { %v1132_v15 = vadd.f32 %v1393_v36, %v1131_v9  ;;  %v2153_v16 = vsel %vm1145_vm0, %v1129_v12, -1e+30 }
 0x5f7   :  { %1186 = vmax.xlane.f32.xlu0 %v2153_v16  ;;  %v2168_v20 = vsel %vm1145_vm0, %v1140_v17, -1e+30 }
 0x5f8   :  { %v2158_v18 = vsel %vm1145_vm0, %v1132_v15, -1e+30 }
 0x5f9   :  { %1188 = vmax.xlane.f32.xlu1 %v2158_v18 }
 0x5fb   :  { %1190 = vmax.xlane.f32.xlu0 %v2163_v19 }
 0x5fd   :  { %1192 = vmax.xlane.f32.xlu1 %v2168_v20 }
 0x66b   :  { %v1167_v21 = vpop.xlane.xlu1 %1166 }
 0x66c   :  { %v2171_v22 = vsub.f32 %v1148_v41, %v1167_v21  ;;  %v1163_v23 = vpop.xlane.xlu0 %1162 }
 0x66d   :  { %v2173_v24 = vsub.f32 %v1146_v42, %v1163_v23 }
 0x66e   :  { %v1214_v25 = vmul.f32 1.442695, %v2171_v22 }
 0x66f   :  { %v1210_v26 = vmul.f32 1.442695, %v2173_v24  ;;  %v1169_v27 = vpop.xlane.xlu1 %1168 }
 0x670   :  { %1740 = vpow2.f32 %v1214_v25  ;;  %v2177_v28 = vsub.f32 %v1149_v4, %v1169_v27  ;;  %v1165_v29 = vpop.xlane.xlu0 %1164 }
 0x671   :  { %v2179_v30 = vsub.f32 %v1147_v5, %v1165_v29  ;;  %1742 = vpow2.f32 %v1210_v26 }
 0x672   :  { %v1216_v31 = vmul.f32 1.442695, %v2177_v28 }
 0x673   :  { %v1212_v32 = vmul.f32 1.442695, %v2179_v30 }
 0x674   :  { %1744 = vpow2.f32 %v1216_v31  ;;  %v1175_v33 = vpop.xlane.xlu0 %1174 }
 0x675   :  { %v2183_v34 = vsub.f32 %v1152_v48, %v1175_v33  ;;  %v1177_v35 = vpop.xlane.xlu1 %1176  ;;  %1746 = vpow2.f32 %v1212_v32 }
 0x676   :  { %v2185_v36 = vsub.f32 %v1153_v51, %v1177_v35 }
 0x677   :  { %v1222_v37 = vmul.f32 1.442695, %v2183_v34 }
 0x678   :  { %v1224_v38 = vmul.f32 1.442695, %v2185_v36  ;;  %v1171_v39 = vpop.xlane.xlu0 %1170 }
 0x679   :  { %1748 = vpow2.f32 %v1222_v37  ;;  %v2189_v40 = vsub.f32 %v1150_v53, %v1171_v39  ;;  %v1173_v0 = vpop.xlane.xlu1 %1172 }
 0x67a   :  { %v1741_v1 = vpop.eup %1740  ;;  %v2191_v2 = vsub.f32 %v1151_v56, %v1173_v0  ;;  %1750 = vpow2.f32 %v1224_v38 }
 0x67b   :  { %v1218_v41 = vmul.f32 1.442695, %v2189_v40  ;;  %1246 = vadd.xlane.f32.xlu0 %v1741_v1  ;;  %v1743_v4 = vpop.eup %1742 }
 0x67c   :  { %v1220_v3 = vmul.f32 1.442695, %v2191_v2  ;;  %v1183_v42 = vpop.xlane.xlu0 %1182 }
 0x67d   :  { %1752 = vpow2.f32 %v1218_v41  ;;  %v2195_v43 = vsub.f32 %v1156_v60, %v1183_v42  ;;  %v1185_v5 = vpop.xlane.xlu1 %1184 }
 0x67e   :  { %v1745_v44 = vpop.eup %1744  ;;  %v2197_v6 = vsub.f32 %v1157_v63, %v1185_v5  ;;  %1754 = vpow2.f32 %v1220_v3 }
 0x67f   :  { %v1230_v45 = vmul.f32 1.442695, %v2195_v43  ;;  %1248 = vadd.xlane.f32.xlu1 %v1745_v44  ;;  %1242 = vadd.xlane.f32.xlu0 %v1743_v4  ;;  %v1747_v50 = vpop.eup %1746 }
 0x680   :  { %v1232_v46 = vmul.f32 1.442695, %v2197_v6  ;;  %v1179_v47 = vpop.xlane.xlu0 %1178 }
 0x681   :  { %1756 = vpow2.f32 %v1230_v45  ;;  %v2202_v48 = vsub.f32 %v2143_v8, %v1179_v47  ;;  %v1181_v49 = vpop.xlane.xlu1 %1180 }
 0x682   :  { %v2205_v51 = vsub.f32 %v2148_v11, %v1181_v49  ;;  %1758 = vpow2.f32 %v1232_v46 }
 0x683   :  { %v1749_v52 = vpop.eup %1748  ;;  %v1226_v53 = vmul.f32 1.442695, %v2202_v48  ;;  %1244 = vadd.xlane.f32.xlu1 %v1747_v50 }
 0x684   :  { %v1228_v54 = vmul.f32 1.442695, %v2205_v51  ;;  %1254 = vadd.xlane.f32.xlu0 %v1749_v52  ;;  %v1187_v55 = vpop.xlane.xlu0 %1186  ;;  %v1751_v57 = vpop.eup %1750 }
 0x685   :  { %1760 = vpow2.f32 %v1226_v53  ;;  %v2210_v56 = vsub.f32 %v2153_v16, %v1187_v55 }
 0x686   :  { %v1189_v58 = vpop.xlane.xlu1 %1188  ;;  %1762 = vpow2.f32 %v1228_v54 }
 0x687   :  { %v1753_v59 = vpop.eup %1752  ;;  %v1234_v60 = vmul.f32 1.442695, %v2210_v56  ;;  %v2214_v61 = vsub.f32 %v2158_v18, %v1189_v58  ;;  %1256 = vadd.xlane.f32.xlu1 %v1751_v57 }
 0x688   :  { %1250 = vadd.xlane.f32.xlu0 %v1753_v59  ;;  %v1191_v62 = vpop.xlane.xlu0 %1190  ;;  %v1755_v8 = vpop.eup %1754 }
 0x689   :  { %1764 = vpow2.f32 %v1234_v60  ;;  %v1236_v63 = vmul.f32 1.442695, %v2214_v61  ;;  %v2218_v7 = vsub.f32 %v2163_v19, %v1191_v62 }
 0x68a   :  { %v1193_v10 = vpop.xlane.xlu1 %1192 }
 0x68b   :  { %v1757_v11 = vpop.eup %1756  ;;  %1766 = vpow2.f32 %v1236_v63  ;;  %v1238_v12 = vmul.f32 1.442695, %v2218_v7  ;;  %v2222_v13 = vsub.f32 %v2168_v20, %v1193_v10  ;;  %1252 = vadd.xlane.f32.xlu1 %v1755_v8 }
 0x68c   :  { %1262 = vadd.xlane.f32.xlu0 %v1757_v11  ;;  %v1759_v14 = vpop.eup %1758 }
 0x68d   :  { %1768 = vpow2.f32 %v1238_v12  ;;  %v1240_v9 = vmul.f32 1.442695, %v2222_v13 }
 0x68f   :  { %v1761_v15 = vpop.eup %1760  ;;  %1770 = vpow2.f32 %v1240_v9  ;;  %1264 = vadd.xlane.f32.xlu1 %v1759_v14 }
 0x690   :  { %1258 = vadd.xlane.f32.xlu0 %v1761_v15  ;;  %v1763_v16 = vpop.eup %1762 }
 0x693   :  { %v1765_v17 = vpop.eup %1764  ;;  %1260 = vadd.xlane.f32.xlu1 %v1763_v16 }
 0x694   :  { %1266 = vadd.xlane.f32.xlu0 %v1765_v17 }
 0x695   :  { %v1767_v18 = vpop.eup %1766 }
 0x697   :  { %v1769_v19 = vpop.eup %1768  ;;  %1268 = vadd.xlane.f32.xlu1 %v1767_v18 }
 0x698   :  { %1270 = vadd.xlane.f32.xlu0 %v1769_v19 }
 0x699   :  { %v1771_v20 = vpop.eup %1770 }
 0x69b   :  { %1272 = vadd.xlane.f32.xlu1 %v1771_v20 }
 0x708   :  { %v1247_v21 = vpop.xlane.xlu0 %1246 }
 0x709   :  { %1772 = vlog2.f32 %v1247_v21 }
 0x70c   :  { %v1249_v23 = vpop.xlane.xlu1 %1248  ;;  %v1243_v25 = vpop.xlane.xlu0 %1242 }
 0x70d   :  { %1774 = vlog2.f32 %v1249_v23 }
 0x70e   :  { %1776 = vlog2.f32 %v1243_v25 }
 0x710   :  { %v1245_v26 = vpop.xlane.xlu1 %1244 }
 0x711   :  { %1778 = vlog2.f32 %v1245_v26  ;;  %v1255_v27 = vpop.xlane.xlu0 %1254 }
 0x712   :  { %1780 = vlog2.f32 %v1255_v27 }
 0x713   :  { %v1773_v29 = vpop.eup %1772 }
 0x714   :  { %v1279_v31 = vmul.f32 0.6931472, %v1773_v29  ;;  %v1257_v32 = vpop.xlane.xlu1 %1256 }
 0x715   :  { %1782 = vlog2.f32 %v1257_v32  ;;  %v1251_v33 = vpop.xlane.xlu0 %1250 }
 0x716   :  { %v1308_v35 = vsub.f32 %v2171_v22, %v1279_v31  ;;  %1784 = vlog2.f32 %v1251_v33 }
 0x717   :  { %v1775_v37 = vpop.eup %1774 }
 0x718   :  { %v1777_v38 = vpop.eup %1776  ;;  %1324 = vst [vmem:[#allocation11 + $0x10] sm:$0xff] %v1308_v35  ;;  %v1281_v39 = vmul.f32 0.6931472, %v1775_v37  ;;  %v1253_v0 = vpop.xlane.xlu1 %1252 }
 0x719   :  { %v1275_v1 = vmul.f32 0.6931472, %v1777_v38  ;;  %1786 = vlog2.f32 %v1253_v0  ;;  %v1263_v41 = vpop.xlane.xlu0 %1262 }
 0x71a   :  { %v1309_v3 = vsub.f32 %v2177_v28, %v1281_v39  ;;  %1788 = vlog2.f32 %v1263_v41 }
 0x71b   :  { %v1779_v42 = vpop.eup %1778  ;;  %v1306_v4 = vsub.f32 %v2173_v24, %v1275_v1 }
 0x71c   :  { %v1781_v5 = vpop.eup %1780  ;;  %1325 = vst [vmem:[#allocation11 + $0x18] sm:$0xff] %v1309_v3  ;;  %v1277_v44 = vmul.f32 0.6931472, %v1779_v42  ;;  %v1265_v45 = vpop.xlane.xlu1 %1264 }
 0x71d   :  { %1322 = vst [vmem:[#allocation11] sm:$0xff] %v1306_v4  ;;  %v1287_v22 = vmul.f32 0.6931472, %v1781_v5  ;;  %1790 = vlog2.f32 %v1265_v45  ;;  %v1259_v46 = vpop.xlane.xlu0 %1258 }
 0x71e   :  { %v1307_v47 = vsub.f32 %v2179_v30, %v1277_v44  ;;  %1792 = vlog2.f32 %v1259_v46 }
 0x71f   :  { %v1783_v49 = vpop.eup %1782  ;;  %v1312_v50 = vsub.f32 %v2183_v34, %v1287_v22 }
 0x720   :  { %v1785_v52 = vpop.eup %1784  ;;  %1323 = vst [vmem:[#allocation11 + $0x8] sm:$0xff] %v1307_v47  ;;  %v1289_v28 = vmul.f32 0.6931472, %v1783_v49  ;;  %v1261_v53 = vpop.xlane.xlu1 %1260 }
 0x721   :  { %1328 = vst [vmem:[#allocation11 + $0x30] sm:$0xff] %v1312_v50  ;;  %v1283_v24 = vmul.f32 0.6931472, %v1785_v52  ;;  %1794 = vlog2.f32 %v1261_v53  ;;  %v1267_v54 = vpop.xlane.xlu0 %1266 }
 0x722   :  { %v1313_v55 = vsub.f32 %v2185_v36, %v1289_v28  ;;  %1796 = vlog2.f32 %v1267_v54 }
 0x723   :  { %v1787_v57 = vpop.eup %1786  ;;  %v1310_v58 = vsub.f32 %v2189_v40, %v1283_v24 }
 0x724   :  { %v1789_v59 = vpop.eup %1788  ;;  %1329 = vst [vmem:[#allocation11 + $0x38] sm:$0xff] %v1313_v55  ;;  %v1285_v30 = vmul.f32 0.6931472, %v1787_v57  ;;  %v1269_v60 = vpop.xlane.xlu1 %1268 }
 0x725   :  { %1326 = vst [vmem:[#allocation11 + $0x20] sm:$0xff] %v1310_v58  ;;  %v1295_v34 = vmul.f32 0.6931472, %v1789_v59  ;;  %1798 = vlog2.f32 %v1269_v60  ;;  %v1271_v62 = vpop.xlane.xlu0 %1270 }
 0x726   :  { %v1311_v63 = vsub.f32 %v2191_v2, %v1285_v30  ;;  %1800 = vlog2.f32 %v1271_v62 }
 0x727   :  { %v1791_v8 = vpop.eup %1790  ;;  %v1316_v10 = vsub.f32 %v2195_v43, %v1295_v34 }
 0x728   :  { %v1793_v11 = vpop.eup %1792  ;;  %1327 = vst [vmem:[#allocation11 + $0x28] sm:$0xff] %v1311_v63  ;;  %v1297_v36 = vmul.f32 0.6931472, %v1791_v8  ;;  %v1273_v12 = vpop.xlane.xlu1 %1272 }
 0x729   :  { %1332 = vst [vmem:[#allocation11 + $0x50] sm:$0xff] %v1316_v10  ;;  %v1291_v40 = vmul.f32 0.6931472, %v1793_v11  ;;  %1802 = vlog2.f32 %v1273_v12 }
 0x72a   :  { %v1317_v9 = vsub.f32 %v2197_v6, %v1297_v36 }
 0x72b   :  { %v1795_v14 = vpop.eup %1794  ;;  %v1314_v15 = vsub.f32 %v2202_v48, %v1291_v40 }
 0x72c   :  { %v1797_v16 = vpop.eup %1796  ;;  %1333 = vst [vmem:[#allocation11 + $0x58] sm:$0xff] %v1317_v9  ;;  %v1293_v17 = vmul.f32 0.6931472, %v1795_v14 }
 0x72d   :  { %1330 = vst [vmem:[#allocation11 + $0x40] sm:$0xff] %v1314_v15  ;;  %v1299_v2 = vmul.f32 0.6931472, %v1797_v16 }
 0x72e   :  { %v1315_v18 = vsub.f32 %v2205_v51, %v1293_v17 }
 0x72f   :  { %v1799_v43 = vpop.eup %1798  ;;  %v1318_v19 = vsub.f32 %v2210_v56, %v1299_v2 }
 0x730   :  { %v1801_v20 = vpop.eup %1800  ;;  %1331 = vst [vmem:[#allocation11 + $0x48] sm:$0xff] %v1315_v18  ;;  %v1301_v21 = vmul.f32 0.6931472, %v1799_v43 }
 0x731   :  { %1334 = vst [vmem:[#allocation11 + $0x60] sm:$0xff] %v1318_v19  ;;  %v1303_v23 = vmul.f32 0.6931472, %v1801_v20 }
 0x732   :  { %v1319_v6 = vsub.f32 %v2214_v61, %v1301_v21 }
 0x733   :  { %v1803_v25 = vpop.eup %1802  ;;  %v1320_v48 = vsub.f32 %v2218_v7, %v1303_v23 }
 0x734   :  { %1335 = vst [vmem:[#allocation11 + $0x68] sm:$0xff] %v1319_v6  ;;  %v1305_v26 = vmul.f32 0.6931472, %v1803_v25 }
 0x735   :  { %1336 = vst [vmem:[#allocation11 + $0x70] sm:$0xff] %v1320_v48 }
 0x736   :  { %v1321_v51 = vsub.f32 %v2222_v13, %v1305_v26 }
 0x738   :  { %1337 = vst [vmem:[#allocation11 + $0x78] sm:$0xff] %v1321_v51 }
 0x739   :  { %1925 = shalt.err (!%p1922_p2)
}
 0x73a   :  { %s1926_s10 = scalar_lea.hbm %s2264_s8, 2048 }
 0x73b   :  { %p1927_p3 = scmp.ne.s32.totalorder %s2264_s8, %s1926_s10  ;;  %p1930_p4 = scmp.lt.u32.totalorder %s1926_s10, %s2264_s8 }
 0x73d   :  { %p1932_p5 = pnand %p1930_p4, %p1927_p3 }
 0x73f   :  { %1935 = shalt.err (!%p1932_p5)
}
 0x740   :  { %1349 = dma.vmem_to_hbm [thread:$0]  %s1344_s30, 2048, %s2264_s8, [#allocation4], %s1949_s4, %s1949_s4, %s1950_s20  }
 0x741   :  { %1942 = dma.done.wait [#allocation4], 2048  }
 0x742   :  { %1943 = vsyncadd [#allocation4], 4294965248 }
 0x743   :  { %1353 = vsyncpa [#allocation3], 1 }
 0x744   :  { %1354 = vsyncpa [#allocation6], 1 }
 0x745   :  { %1355 = vsyncpa [#allocation9], 1 }
 0x746   :  { %1356 = vsyncpa [#allocation4], 1 }

</bundles_post_ra>
